<compile_context>
chip_gen: v6e
topology: v6e:2x2x1
jax: 0.10.0
libtpu: 0.0.40
codegen_flags: <defaults>
</compile_context>

<pallas_src>
import jax
import jax.numpy as jnp
from jax.experimental import pallas as pl
from jax.experimental.pallas import tpu as pltpu

# Small synthetic configuration consistent with the module structure
# (guide_channel must be divisible by 3 so torch.chunk matches box_filter2).
B = 2
H = W = 8                # powers of two (lane-index bit tricks rely on this)
P = B * H * W            # 128 -> exactly one full lane dimension
GC = 12                  # guide_channel
CG = GC // 3             # per-chunk guide channels (box_filter2 in-channels)
GCP = -(-GC // 8) * 8    # guide channels zero-padded to a sublane-tile multiple (16)
C = 8                    # channel
IC = 16                  # innerchannel
NB = 3                   # guided-filter branches
BN_EPS = 1e-5


# --------------------------------- the kernel ---------------------------------

def _bn_relu(t):
    """BatchNorm2d (training-mode batch stats, biased var, gamma=1, beta=0) + ReLU.
    Channels on sublanes, the B*H*W samples on lanes -> one lane reduction each."""
    inv_p = 1.0 / P
    mean = jnp.sum(t, axis=1, keepdims=True) * inv_p
    var = jnp.sum(t * t, axis=1, keepdims=True) * inv_p - mean * mean
    var = jnp.maximum(var, 0.0)                       # guard rsqrt (review note)
    return jnp.maximum((t - mean) * jax.lax.rsqrt(var + BN_EPS), 0.0)


def _egf_kernel(x_ref,        # (GCP, P)      guide, channel-major, zero-padded rows
                y_ref,        # (C, P)
                w_tap_ref,    # (NB*C, 9*GCP) box_filter2 taps, block-diag, tap-major
                w_cv_ref,     # (NB*IC, 2*NB) first conv_a layer (cov|var collapsed)
                w2_ref,       # (NB*IC, NB*IC) second conv_a layer, block-diag
                w3_ref,       # (NB*C, NB*IC)  third conv_a layer, block-diag
                w_fuse_ref,   # (C, NB*C)     fusion conv, softmax gate folded in
                b_fuse_ref,   # (C, 1)
                out_ref):     # (C, P)
    f32 = jnp.float32
    x = x_ref[...]
    y = y_ref[...]

    # ---- boundary masks & 1/N map from the lane position (no HBM constants).
    #      lane p = b*H*W + h*W + w ;  H, W are powers of two.
    lane = jax.lax.broadcasted_iota(jnp.int32, (1, P), 1)
    wp = lane & (W - 1)                       # w index
    hw = lane & (H * W - 1)                   # h*W + w within one image
    m_wl = jnp.where(wp >= 1, 1.0, 0.0).astype(f32)          # left  neighbor valid
    m_wr = jnp.where(wp <= W - 2, 1.0, 0.0).astype(f32)      # right neighbor valid
    m_hu = jnp.where(hw >= W, 1.0, 0.0).astype(f32)          # up    neighbor valid
    m_hd = jnp.where(hw < (H - 1) * W, 1.0, 0.0).astype(f32) # down  neighbor valid
    inv_n = 1.0 / (C * (1.0 + m_wl + m_wr) * (1.0 + m_hu + m_hd))   # 1 / box(ones_C)

    def wsum(t):
        """3x3 all-ones box filter (zero padded), separable: 4 lane rolls (XLU)."""
        t = t + pltpu.roll(t, 1, 1) * m_wl + pltpu.roll(t, P - 1, 1) * m_wr
        return t + pltpu.roll(t, W, 1) * m_hu + pltpu.roll(t, P - W, 1) * m_hd

    # ---- box_filter2 (3x3 conv) for all 3 branches:
    #      8 masked lane-rolls -> tile-aligned (9*GCP, P) stack -> ONE K=144 matmul.
    def shifted(dh, dw):                      # value of x at (h+dh, w+dw), 0 if OOB
        s = (-(dh * W + dw)) % P
        xs = pltpu.roll(x, s, 1) if s else x
        m = None
        if dh:
            m = m_hu if dh < 0 else m_hd
        if dw:
            mw = m_wl if dw < 0 else m_wr
            m = mw if m is None else m * mw
        return xs if m is None else xs * m

    x_stack = jnp.concatenate(
        [shifted(dh, dw) for dh in (-1, 0, 1) for dw in (-1, 0, 1)], axis=0)
    xg = jnp.dot(w_tap_ref[...], x_stack, preferred_element_type=f32)   # (NB*C, P)

    # ---- per-branch box-filtered statistics:
    #      channel sums = sublane reductions over aligned 8-row blocks,
    #      window sums = separable rolls; mean_y computed once (branch-invariant).
    mean_y = wsum(jnp.sum(y, axis=0, keepdims=True)) * inv_n            # (1, P)
    mean_x, cov, var = [], [], []
    for br in range(NB):
        xb = xg[br * C:(br + 1) * C]                                    # aligned view
        mx = wsum(jnp.sum(xb, axis=0, keepdims=True)) * inv_n
        sxy = wsum(jnp.sum(xb * y, axis=0, keepdims=True)) * inv_n
        sxx = wsum(jnp.sum(xb * xb, axis=0, keepdims=True)) * inv_n
        mean_x.append(mx)
        cov.append(sxy - mx * mean_y)
        var.append(sxx - mx * mx)

    # ---- conv_a for the 3 branches, block-diagonally batched (3 matmuls total)
    cv_in = jnp.concatenate(cov + var, axis=0)                          # (2*NB, P)
    t1 = _bn_relu(jnp.dot(w_cv_ref[...], cv_in, preferred_element_type=f32))
    t2 = _bn_relu(jnp.dot(w2_ref[...], t1, preferred_element_type=f32))
    a = jnp.dot(w3_ref[...], t2, preferred_element_type=f32)            # (NB*C, P)

    # ---- guided outputs (same-size bilinear interpolate == identity); fuse.
    guide = jnp.concatenate(
        [a[br * C:(br + 1) * C] * (xg[br * C:(br + 1) * C] - mean_x[br]) + mean_y
         for br in range(NB)], axis=0)                                  # (NB*C, P)
    out = jnp.dot(w_fuse_ref[...], guide, preferred_element_type=f32)   # (C, P)
    out_ref[...] = out + b_fuse_ref[...]


# ----------------------- one-time weight repacking (host) -----------------------

def pack_params(params):
    """Repack module weights into the matrices the kernel consumes.  Done ONCE at
    init (hoisted out of the per-call jit path); folds the softmax gate into the
    fusion-conv columns and collapses the channel-constant cov/var inputs."""
    nor_w = jax.nn.softmax(params["gate"])

    # box_filter2: (NB, C, CG, 3, 3) -> per-tap block-diag (NB*C, GC) blocks,
    # zero-padded to GCP columns and concatenated tap-major -> (NB*C, 9*GCP).
    wb = params["w_bf2"]
    taps = []
    for kh in range(3):
        for kw in range(3):
            blk = jax.scipy.linalg.block_diag(*[wb[br, :, :, kh, kw] for br in range(NB)])
            taps.append(jnp.pad(blk, ((0, 0), (0, GCP - GC))))
    w_tap = jnp.concatenate(taps, axis=1).astype(jnp.float32)

    # first conv_a layer: cov/var inputs are channel-constant -> collapse the C
    # identical input channels of each half; merge cov & var into one (48,6) weight.
    wa1 = params["w_a1"]                                     # (NB, IC, 2C)
    w_cov = jnp.sum(wa1[:, :, :C], axis=2)                   # (NB, IC)
    w_var = jnp.sum(wa1[:, :, C:], axis=2)                   # (NB, IC)
    w_cv = jnp.zeros((NB * IC, 2 * NB), jnp.float32)
    for br in range(NB):
        w_cv = w_cv.at[br * IC:(br + 1) * IC, br].set(w_cov[br])
        w_cv = w_cv.at[br * IC:(br + 1) * IC, NB + br].set(w_var[br])

    w2_blk = jax.scipy.linalg.block_diag(*[params["w_a2"][br] for br in range(NB)])
    w3_blk = jax.scipy.linalg.block_diag(*[params["w_a3"][br] for br in range(NB)])

    # fusion 1x1 conv with the softmax gate folded into its weight columns.
    gate_cols = jnp.repeat(nor_w, C)[None, :]                # (1, NB*C)
    w_fuse = (params["w_fuse"] * gate_cols).astype(jnp.float32)
    b_fuse = params["b_fuse"][:, None].astype(jnp.float32)   # (C, 1)
    return (w_tap, w_cv, w2_blk.astype(jnp.float32),
            w3_blk.astype(jnp.float32), w_fuse, b_fuse)


# ------------------------------------ wrapper ------------------------------------

_VMEM = pl.BlockSpec(memory_space=pltpu.MemorySpace.VMEM)


@jax.jit
def enhance_guided_filter(x_lr, y_lr, packed):
    """x_lr: (B, GC, H, W), y_lr: (B, C, H, W) -> (B, C, H, W), NCHW f32.
    `packed` = pack_params(params), computed once outside the per-call path."""
    w_tap, w_cv, w2_blk, w3_blk, w_fuse, b_fuse = packed

    # NCHW -> lane-dense (channels, B*H*W); pad guide rows to a sublane-tile multiple
    # so the in-kernel 9-tap stack is tile aligned.
    x = jnp.transpose(x_lr, (1, 0, 2, 3)).reshape(GC, P).astype(jnp.float32)
    x = jnp.pad(x, ((0, GCP - GC), (0, 0)))
    y = jnp.transpose(y_lr, (1, 0, 2, 3)).reshape(C, P).astype(jnp.float32)

    # Single no-grid call: total working set ~40 KiB of VMEM.  At realistic sizes
    # (P >> 128), grid the lane axis (>=512-lane blocks, dimension_semantics=
    # ("parallel",)) so both v7x TensorCores participate.
    out = pl.pallas_call(
        _egf_kernel,
        out_shape=jax.ShapeDtypeStruct((C, P), jnp.float32),
        in_specs=[_VMEM] * 8,
        out_specs=_VMEM,
    )(x, y, w_tap, w_cv, w2_blk, w3_blk, w_fuse, b_fuse)

    return jnp.transpose(out.reshape(C, B, H, W), (1, 0, 2, 3))


def init_params(key):
    ks = jax.random.split(key, 7)
    s = 0.1
    return dict(
        w_bf2=jax.random.normal(ks[0], (NB, C, CG, 3, 3), jnp.float32) * s,
        w_a1=jax.random.normal(ks[1], (NB, IC, 2 * C), jnp.float32) * s,
        w_a2=jax.random.normal(ks[2], (NB, IC, IC), jnp.float32) * s,
        w_a3=jax.random.normal(ks[3], (NB, C, IC), jnp.float32) * s,
        w_fuse=jax.random.normal(ks[4], (C, NB * C), jnp.float32) * s,
        b_fuse=jax.random.normal(ks[5], (C,), jnp.float32) * s,
        gate=jnp.ones((NB,), jnp.float32),      # nn.Parameter(torch.ones(3))
    )


# --------------------------- pure-JAX reference (NCHW) --------------------------

def _reference(x_lr, y_lr, params):
    hp = jax.lax.Precision.HIGHEST
    nor_w = jax.nn.softmax(params["gate"])

    def conv3x3(x, w):                                  # w: (Co, Ci, 3, 3), pad=1
        xp = jnp.pad(x, ((0, 0), (0, 0), (1, 1), (1, 1)))
        out = jnp.zeros((x.shape[0], w.shape[0], H, W), jnp.float32)
        for kh in range(3):
            for kw in range(3):
                out = out + jnp.einsum("oc,bchw->bohw", w[:, :, kh, kw],
                                       xp[:, :, kh:kh + H, kw:kw + W], precision=hp)
        return out

    def conv1x1(x, w):                                  # w: (Co, Ci)
        return jnp.einsum("oc,bchw->bohw", w, x, precision=hp)

    def bn_relu(x):
        mean = jnp.mean(x, axis=(0, 2, 3), keepdims=True)
        var = jnp.mean((x - mean) ** 2, axis=(0, 2, 3), keepdims=True)
        return jnp.maximum((x - mean) * jax.lax.rsqrt(var + BN_EPS), 0.0)

    ones_w = jnp.ones((C, C, 3, 3), jnp.float32)
    n_map = conv3x3(jnp.ones((B, C, H, W), jnp.float32), ones_w)
    guides = []
    for br in range(NB):
        xg = conv3x3(x_lr[:, br * CG:(br + 1) * CG], params["w_bf2"][br])
        mean_x = conv3x3(xg, ones_w) / n_map
        mean_y = conv3x3(y_lr, ones_w) / n_map
        cov = conv3x3(xg * y_lr, ones_w) / n_map - mean_x * mean_y
        var = conv3x3(xg * xg, ones_w) / n_map - mean_x * mean_x
        t = bn_relu(conv1x1(jnp.concatenate([cov, var], axis=1), params["w_a1"][br]))
        t = bn_relu(conv1x1(t, params["w_a2"][br]))
        a = conv1x1(t, params["w_a3"][br])
        b_map = mean_y - a * mean_x
        guides.append((a * xg + b_map) * nor_w[br])
    g = jnp.concatenate(guides, axis=1)
    return conv1x1(g, params["w_fuse"]) + params["b_fuse"][None, :, None, None]


if __name__ == "__main__":
    key = jax.random.PRNGKey(0)
    kx, ky, kp = jax.random.split(key, 3)
    x_lr = jax.random.normal(kx, (B, GC, H, W), jnp.float32)
    y_lr = jax.random.normal(ky, (B, C, H, W), jnp.float32)
    params = init_params(kp)

    # one-time weight repacking, hoisted out of the per-call path
    packed = jax.tree_util.tree_map(jax.block_until_ready, pack_params(params))

    out = jax.block_until_ready(enhance_guided_filter(x_lr, y_lr, packed))
    assert out.shape == (B, C, H, W), out.shape
    assert bool(jnp.all(jnp.isfinite(out)))

    ref = jax.block_until_ready(_reference(x_lr, y_lr, params))
    err = float(jnp.max(jnp.abs(out - ref)))
    assert err < 1e-2, f"max abs error vs pure-JAX reference: {err}"

    print("KERNEL_OK")
</pallas_src>

<mosaic_0001>
module attributes {stable_mosaic.version = 11 : i64} {
  func.func @_egf_kernel(%arg0: memref<16x128xf32, #tpu.memory_space<vmem>>, %arg1: memref<8x128xf32, #tpu.memory_space<vmem>>, %arg2: memref<24x144xf32, #tpu.memory_space<vmem>>, %arg3: memref<48x6xf32, #tpu.memory_space<vmem>>, %arg4: memref<48x48xf32, #tpu.memory_space<vmem>>, %arg5: memref<24x48xf32, #tpu.memory_space<vmem>>, %arg6: memref<8x24xf32, #tpu.memory_space<vmem>>, %arg7: memref<8x1xf32, #tpu.memory_space<vmem>>, %arg8: memref<8x128xf32, #tpu.memory_space<vmem>>) attributes {dimension_semantics = [], scalar_prefetch = 0 : i64, scratch_operands = 0 : i64, tpu.core_type = #tpu.core_type<tc>} {
    %c0 = arith.constant 0 : index
    %c0_0 = arith.constant 0 : index
    %0 = vector.load %arg0[%c0, %c0_0] : memref<16x128xf32, #tpu.memory_space<vmem>>, vector<16x128xf32>
    %c0_1 = arith.constant 0 : index
    %c0_2 = arith.constant 0 : index
    %1 = vector.load %arg1[%c0_1, %c0_2] : memref<8x128xf32, #tpu.memory_space<vmem>>, vector<8x128xf32>
    %2 = tpu.iota {dimensions = array<i32: 1>} : vector<1x128xi32>
    %c7_i32 = arith.constant 7 : i32
    %3 = vector.broadcast %c7_i32 : i32 to vector<1x128xi32>
    %4 = arith.andi %2, %3 : vector<1x128xi32>
    %c63_i32 = arith.constant 63 : i32
    %5 = vector.broadcast %c63_i32 : i32 to vector<1x128xi32>
    %6 = arith.andi %2, %5 : vector<1x128xi32>
    %c1_i32 = arith.constant 1 : i32
    %7 = vector.broadcast %c1_i32 : i32 to vector<1x128xi32>
    %8 = arith.cmpi sge, %4, %7 : vector<1x128xi32>
    %cst = arith.constant 1.000000e+00 : f32
    %cst_3 = arith.constant 0.000000e+00 : f32
    %9 = vector.broadcast %cst : f32 to vector<1x128xf32>
    %10 = vector.broadcast %cst_3 : f32 to vector<1x128xf32>
    %11 = arith.select %8, %9, %10 : vector<1x128xi1>, vector<1x128xf32>
    %c6_i32 = arith.constant 6 : i32
    %12 = vector.broadcast %c6_i32 : i32 to vector<1x128xi32>
    %13 = arith.cmpi sle, %4, %12 : vector<1x128xi32>
    %cst_4 = arith.constant 1.000000e+00 : f32
    %cst_5 = arith.constant 0.000000e+00 : f32
    %14 = vector.broadcast %cst_4 : f32 to vector<1x128xf32>
    %15 = vector.broadcast %cst_5 : f32 to vector<1x128xf32>
    %16 = arith.select %13, %14, %15 : vector<1x128xi1>, vector<1x128xf32>
    %c8_i32 = arith.constant 8 : i32
    %17 = vector.broadcast %c8_i32 : i32 to vector<1x128xi32>
    %18 = arith.cmpi sge, %6, %17 : vector<1x128xi32>
    %cst_6 = arith.constant 1.000000e+00 : f32
    %cst_7 = arith.constant 0.000000e+00 : f32
    %19 = vector.broadcast %cst_6 : f32 to vector<1x128xf32>
    %20 = vector.broadcast %cst_7 : f32 to vector<1x128xf32>
    %21 = arith.select %18, %19, %20 : vector<1x128xi1>, vector<1x128xf32>
    %c56_i32 = arith.constant 56 : i32
    %22 = vector.broadcast %c56_i32 : i32 to vector<1x128xi32>
    %23 = arith.cmpi slt, %6, %22 : vector<1x128xi32>
    %cst_8 = arith.constant 1.000000e+00 : f32
    %cst_9 = arith.constant 0.000000e+00 : f32
    %24 = vector.broadcast %cst_8 : f32 to vector<1x128xf32>
    %25 = vector.broadcast %cst_9 : f32 to vector<1x128xf32>
    %26 = arith.select %23, %24, %25 : vector<1x128xi1>, vector<1x128xf32>
    %cst_10 = arith.constant 1.000000e+00 : f32
    %27 = vector.broadcast %cst_10 : f32 to vector<1x128xf32>
    %28 = arith.addf %27, %11 : vector<1x128xf32>
    %29 = arith.addf %28, %16 : vector<1x128xf32>
    %cst_11 = arith.constant 8.000000e+00 : f32
    %30 = vector.broadcast %cst_11 : f32 to vector<1x128xf32>
    %31 = arith.mulf %30, %29 : vector<1x128xf32>
    %cst_12 = arith.constant 1.000000e+00 : f32
    %32 = vector.broadcast %cst_12 : f32 to vector<1x128xf32>
    %33 = arith.addf %32, %21 : vector<1x128xf32>
    %34 = arith.addf %33, %26 : vector<1x128xf32>
    %35 = arith.mulf %31, %34 : vector<1x128xf32>
    %cst_13 = arith.constant 1.000000e+00 : f32
    %36 = vector.broadcast %cst_13 : f32 to vector<1x128xf32>
    %37 = arith.divf %36, %35 : vector<1x128xf32>
    %c9_i32 = arith.constant 9 : i32
    %38 = tpu.dynamic_rotate %0 by %c9_i32 dim 1 : vector<16x128xf32>, i32 -> vector<16x128xf32>
    %39 = arith.mulf %21, %11 : vector<1x128xf32>
    %40 = vector.broadcast %39 : vector<1x128xf32> to vector<16x128xf32>
    %41 = arith.mulf %38, %40 : vector<16x128xf32>
    %c8_i32_14 = arith.constant 8 : i32
    %42 = tpu.dynamic_rotate %0 by %c8_i32_14 dim 1 : vector<16x128xf32>, i32 -> vector<16x128xf32>
    %43 = vector.broadcast %21 : vector<1x128xf32> to vector<16x128xf32>
    %44 = arith.mulf %42, %43 : vector<16x128xf32>
    %c7_i32_15 = arith.constant 7 : i32
    %45 = tpu.dynamic_rotate %0 by %c7_i32_15 dim 1 : vector<16x128xf32>, i32 -> vector<16x128xf32>
    %46 = arith.mulf %21, %16 : vector<1x128xf32>
    %47 = vector.broadcast %46 : vector<1x128xf32> to vector<16x128xf32>
    %48 = arith.mulf %45, %47 : vector<16x128xf32>
    %c1_i32_16 = arith.constant 1 : i32
    %49 = tpu.dynamic_rotate %0 by %c1_i32_16 dim 1 : vector<16x128xf32>, i32 -> vector<16x128xf32>
    %50 = vector.broadcast %11 : vector<1x128xf32> to vector<16x128xf32>
    %51 = arith.mulf %49, %50 : vector<16x128xf32>
    %c127_i32 = arith.constant 127 : i32
    %52 = tpu.dynamic_rotate %0 by %c127_i32 dim 1 : vector<16x128xf32>, i32 -> vector<16x128xf32>
    %53 = vector.broadcast %16 : vector<1x128xf32> to vector<16x128xf32>
    %54 = arith.mulf %52, %53 : vector<16x128xf32>
    %c121_i32 = arith.constant 121 : i32
    %55 = tpu.dynamic_rotate %0 by %c121_i32 dim 1 : vector<16x128xf32>, i32 -> vector<16x128xf32>
    %56 = arith.mulf %26, %11 : vector<1x128xf32>
    %57 = vector.broadcast %56 : vector<1x128xf32> to vector<16x128xf32>
    %58 = arith.mulf %55, %57 : vector<16x128xf32>
    %c120_i32 = arith.constant 120 : i32
    %59 = tpu.dynamic_rotate %0 by %c120_i32 dim 1 : vector<16x128xf32>, i32 -> vector<16x128xf32>
    %60 = vector.broadcast %26 : vector<1x128xf32> to vector<16x128xf32>
    %61 = arith.mulf %59, %60 : vector<16x128xf32>
    %c119_i32 = arith.constant 119 : i32
    %62 = tpu.dynamic_rotate %0 by %c119_i32 dim 1 : vector<16x128xf32>, i32 -> vector<16x128xf32>
    %63 = arith.mulf %26, %16 : vector<1x128xf32>
    %64 = vector.broadcast %63 : vector<1x128xf32> to vector<16x128xf32>
    %65 = arith.mulf %62, %64 : vector<16x128xf32>
    %66 = tpu.concatenate %41, %44, %48, %51, %0, %54, %58, %61, %65 in 0 : vector<16x128xf32>, vector<16x128xf32>, vector<16x128xf32>, vector<16x128xf32>, vector<16x128xf32>, vector<16x128xf32>, vector<16x128xf32>, vector<16x128xf32>, vector<16x128xf32> -> vector<144x128xf32>
    %c0_17 = arith.constant 0 : index
    %c0_18 = arith.constant 0 : index
    %67 = vector.load %arg2[%c0_17, %c0_18] : memref<24x144xf32, #tpu.memory_space<vmem>>, vector<24x144xf32>
    %cst_19 = arith.constant dense<0.000000e+00> : vector<24x128xf32>
    %68 = tpu.matmul %67, %66, %cst_19 {dimension_numbers = #tpu.dot_dimension_numbers<[1], [0], [0], [1], [0, 0, 1, 1], [], []>} : vector<24x144xf32>, vector<144x128xf32>, vector<24x128xf32> -> vector<24x128xf32>
    %cst_20 = arith.constant dense<0.000000e+00> : vector<128xf32>
    %69 = vector.multi_reduction <add>, %1, %cst_20 [0] : vector<8x128xf32> to vector<128xf32>
    %70 = vector.shape_cast %69 : vector<128xf32> to vector<1x128xf32>
    %c1_i32_21 = arith.constant 1 : i32
    %71 = tpu.dynamic_rotate %70 by %c1_i32_21 dim 1 : vector<1x128xf32>, i32 -> vector<1x128xf32>
    %72 = arith.mulf %71, %11 : vector<1x128xf32>
    %73 = arith.addf %70, %72 : vector<1x128xf32>
    %c127_i32_22 = arith.constant 127 : i32
    %74 = tpu.dynamic_rotate %70 by %c127_i32_22 dim 1 : vector<1x128xf32>, i32 -> vector<1x128xf32>
    %75 = arith.mulf %74, %16 : vector<1x128xf32>
    %76 = arith.addf %73, %75 : vector<1x128xf32>
    %c8_i32_23 = arith.constant 8 : i32
    %77 = tpu.dynamic_rotate %76 by %c8_i32_23 dim 1 : vector<1x128xf32>, i32 -> vector<1x128xf32>
    %78 = arith.mulf %77, %21 : vector<1x128xf32>
    %79 = arith.addf %76, %78 : vector<1x128xf32>
    %c120_i32_24 = arith.constant 120 : i32
    %80 = tpu.dynamic_rotate %76 by %c120_i32_24 dim 1 : vector<1x128xf32>, i32 -> vector<1x128xf32>
    %81 = arith.mulf %80, %26 : vector<1x128xf32>
    %82 = arith.addf %79, %81 : vector<1x128xf32>
    %83 = arith.mulf %82, %37 : vector<1x128xf32>
    %84 = vector.extract_strided_slice %68 {offsets = [0, 0], sizes = [8, 128], strides = [1, 1]} : vector<24x128xf32> to vector<8x128xf32>
    %cst_25 = arith.constant dense<0.000000e+00> : vector<128xf32>
    %85 = vector.multi_reduction <add>, %84, %cst_25 [0] : vector<8x128xf32> to vector<128xf32>
    %86 = vector.shape_cast %85 : vector<128xf32> to vector<1x128xf32>
    %c1_i32_26 = arith.constant 1 : i32
    %87 = tpu.dynamic_rotate %86 by %c1_i32_26 dim 1 : vector<1x128xf32>, i32 -> vector<1x128xf32>
    %88 = arith.mulf %87, %11 : vector<1x128xf32>
    %89 = arith.addf %86, %88 : vector<1x128xf32>
    %c127_i32_27 = arith.constant 127 : i32
    %90 = tpu.dynamic_rotate %86 by %c127_i32_27 dim 1 : vector<1x128xf32>, i32 -> vector<1x128xf32>
    %91 = arith.mulf %90, %16 : vector<1x128xf32>
    %92 = arith.addf %89, %91 : vector<1x128xf32>
    %c8_i32_28 = arith.constant 8 : i32
    %93 = tpu.dynamic_rotate %92 by %c8_i32_28 dim 1 : vector<1x128xf32>, i32 -> vector<1x128xf32>
    %94 = arith.mulf %93, %21 : vector<1x128xf32>
    %95 = arith.addf %92, %94 : vector<1x128xf32>
    %c120_i32_29 = arith.constant 120 : i32
    %96 = tpu.dynamic_rotate %92 by %c120_i32_29 dim 1 : vector<1x128xf32>, i32 -> vector<1x128xf32>
    %97 = arith.mulf %96, %26 : vector<1x128xf32>
    %98 = arith.addf %95, %97 : vector<1x128xf32>
    %99 = arith.mulf %98, %37 : vector<1x128xf32>
    %100 = arith.mulf %84, %1 : vector<8x128xf32>
    %cst_30 = arith.constant dense<0.000000e+00> : vector<128xf32>
    %101 = vector.multi_reduction <add>, %100, %cst_30 [0] : vector<8x128xf32> to vector<128xf32>
    %102 = vector.shape_cast %101 : vector<128xf32> to vector<1x128xf32>
    %c1_i32_31 = arith.constant 1 : i32
    %103 = tpu.dynamic_rotate %102 by %c1_i32_31 dim 1 : vector<1x128xf32>, i32 -> vector<1x128xf32>
    %104 = arith.mulf %103, %11 : vector<1x128xf32>
    %105 = arith.addf %102, %104 : vector<1x128xf32>
    %c127_i32_32 = arith.constant 127 : i32
    %106 = tpu.dynamic_rotate %102 by %c127_i32_32 dim 1 : vector<1x128xf32>, i32 -> vector<1x128xf32>
    %107 = arith.mulf %106, %16 : vector<1x128xf32>
    %108 = arith.addf %105, %107 : vector<1x128xf32>
    %c8_i32_33 = arith.constant 8 : i32
    %109 = tpu.dynamic_rotate %108 by %c8_i32_33 dim 1 : vector<1x128xf32>, i32 -> vector<1x128xf32>
    %110 = arith.mulf %109, %21 : vector<1x128xf32>
    %111 = arith.addf %108, %110 : vector<1x128xf32>
    %c120_i32_34 = arith.constant 120 : i32
    %112 = tpu.dynamic_rotate %108 by %c120_i32_34 dim 1 : vector<1x128xf32>, i32 -> vector<1x128xf32>
    %113 = arith.mulf %112, %26 : vector<1x128xf32>
    %114 = arith.addf %111, %113 : vector<1x128xf32>
    %115 = arith.mulf %114, %37 : vector<1x128xf32>
    %116 = arith.mulf %84, %84 : vector<8x128xf32>
    %cst_35 = arith.constant dense<0.000000e+00> : vector<128xf32>
    %117 = vector.multi_reduction <add>, %116, %cst_35 [0] : vector<8x128xf32> to vector<128xf32>
    %118 = vector.shape_cast %117 : vector<128xf32> to vector<1x128xf32>
    %c1_i32_36 = arith.constant 1 : i32
    %119 = tpu.dynamic_rotate %118 by %c1_i32_36 dim 1 : vector<1x128xf32>, i32 -> vector<1x128xf32>
    %120 = arith.mulf %119, %11 : vector<1x128xf32>
    %121 = arith.addf %118, %120 : vector<1x128xf32>
    %c127_i32_37 = arith.constant 127 : i32
    %122 = tpu.dynamic_rotate %118 by %c127_i32_37 dim 1 : vector<1x128xf32>, i32 -> vector<1x128xf32>
    %123 = arith.mulf %122, %16 : vector<1x128xf32>
    %124 = arith.addf %121, %123 : vector<1x128xf32>
    %c8_i32_38 = arith.constant 8 : i32
    %125 = tpu.dynamic_rotate %124 by %c8_i32_38 dim 1 : vector<1x128xf32>, i32 -> vector<1x128xf32>
    %126 = arith.mulf %125, %21 : vector<1x128xf32>
    %127 = arith.addf %124, %126 : vector<1x128xf32>
    %c120_i32_39 = arith.constant 120 : i32
    %128 = tpu.dynamic_rotate %124 by %c120_i32_39 dim 1 : vector<1x128xf32>, i32 -> vector<1x128xf32>
    %129 = arith.mulf %128, %26 : vector<1x128xf32>
    %130 = arith.addf %127, %129 : vector<1x128xf32>
    %131 = arith.mulf %130, %37 : vector<1x128xf32>
    %132 = arith.mulf %99, %83 : vector<1x128xf32>
    %133 = arith.subf %115, %132 : vector<1x128xf32>
    %134 = arith.mulf %99, %99 : vector<1x128xf32>
    %135 = arith.subf %131, %134 : vector<1x128xf32>
    %136 = vector.extract_strided_slice %68 {offsets = [8, 0], sizes = [8, 128], strides = [1, 1]} : vector<24x128xf32> to vector<8x128xf32>
    %cst_40 = arith.constant dense<0.000000e+00> : vector<128xf32>
    %137 = vector.multi_reduction <add>, %136, %cst_40 [0] : vector<8x128xf32> to vector<128xf32>
    %138 = vector.shape_cast %137 : vector<128xf32> to vector<1x128xf32>
    %c1_i32_41 = arith.constant 1 : i32
    %139 = tpu.dynamic_rotate %138 by %c1_i32_41 dim 1 : vector<1x128xf32>, i32 -> vector<1x128xf32>
    %140 = arith.mulf %139, %11 : vector<1x128xf32>
    %141 = arith.addf %138, %140 : vector<1x128xf32>
    %c127_i32_42 = arith.constant 127 : i32
    %142 = tpu.dynamic_rotate %138 by %c127_i32_42 dim 1 : vector<1x128xf32>, i32 -> vector<1x128xf32>
    %143 = arith.mulf %142, %16 : vector<1x128xf32>
    %144 = arith.addf %141, %143 : vector<1x128xf32>
    %c8_i32_43 = arith.constant 8 : i32
    %145 = tpu.dynamic_rotate %144 by %c8_i32_43 dim 1 : vector<1x128xf32>, i32 -> vector<1x128xf32>
    %146 = arith.mulf %145, %21 : vector<1x128xf32>
    %147 = arith.addf %144, %146 : vector<1x128xf32>
    %c120_i32_44 = arith.constant 120 : i32
    %148 = tpu.dynamic_rotate %144 by %c120_i32_44 dim 1 : vector<1x128xf32>, i32 -> vector<1x128xf32>
    %149 = arith.mulf %148, %26 : vector<1x128xf32>
    %150 = arith.addf %147, %149 : vector<1x128xf32>
    %151 = arith.mulf %150, %37 : vector<1x128xf32>
    %152 = arith.mulf %136, %1 : vector<8x128xf32>
    %cst_45 = arith.constant dense<0.000000e+00> : vector<128xf32>
    %153 = vector.multi_reduction <add>, %152, %cst_45 [0] : vector<8x128xf32> to vector<128xf32>
    %154 = vector.shape_cast %153 : vector<128xf32> to vector<1x128xf32>
    %c1_i32_46 = arith.constant 1 : i32
    %155 = tpu.dynamic_rotate %154 by %c1_i32_46 dim 1 : vector<1x128xf32>, i32 -> vector<1x128xf32>
    %156 = arith.mulf %155, %11 : vector<1x128xf32>
    %157 = arith.addf %154, %156 : vector<1x128xf32>
    %c127_i32_47 = arith.constant 127 : i32
    %158 = tpu.dynamic_rotate %154 by %c127_i32_47 dim 1 : vector<1x128xf32>, i32 -> vector<1x128xf32>
    %159 = arith.mulf %158, %16 : vector<1x128xf32>
    %160 = arith.addf %157, %159 : vector<1x128xf32>
    %c8_i32_48 = arith.constant 8 : i32
    %161 = tpu.dynamic_rotate %160 by %c8_i32_48 dim 1 : vector<1x128xf32>, i32 -> vector<1x128xf32>
    %162 = arith.mulf %161, %21 : vector<1x128xf32>
    %163 = arith.addf %160, %162 : vector<1x128xf32>
    %c120_i32_49 = arith.constant 120 : i32
    %164 = tpu.dynamic_rotate %160 by %c120_i32_49 dim 1 : vector<1x128xf32>, i32 -> vector<1x128xf32>
    %165 = arith.mulf %164, %26 : vector<1x128xf32>
    %166 = arith.addf %163, %165 : vector<1x128xf32>
    %167 = arith.mulf %166, %37 : vector<1x128xf32>
    %168 = arith.mulf %136, %136 : vector<8x128xf32>
    %cst_50 = arith.constant dense<0.000000e+00> : vector<128xf32>
    %169 = vector.multi_reduction <add>, %168, %cst_50 [0] : vector<8x128xf32> to vector<128xf32>
    %170 = vector.shape_cast %169 : vector<128xf32> to vector<1x128xf32>
    %c1_i32_51 = arith.constant 1 : i32
    %171 = tpu.dynamic_rotate %170 by %c1_i32_51 dim 1 : vector<1x128xf32>, i32 -> vector<1x128xf32>
    %172 = arith.mulf %171, %11 : vector<1x128xf32>
    %173 = arith.addf %170, %172 : vector<1x128xf32>
    %c127_i32_52 = arith.constant 127 : i32
    %174 = tpu.dynamic_rotate %170 by %c127_i32_52 dim 1 : vector<1x128xf32>, i32 -> vector<1x128xf32>
    %175 = arith.mulf %174, %16 : vector<1x128xf32>
    %176 = arith.addf %173, %175 : vector<1x128xf32>
    %c8_i32_53 = arith.constant 8 : i32
    %177 = tpu.dynamic_rotate %176 by %c8_i32_53 dim 1 : vector<1x128xf32>, i32 -> vector<1x128xf32>
    %178 = arith.mulf %177, %21 : vector<1x128xf32>
    %179 = arith.addf %176, %178 : vector<1x128xf32>
    %c120_i32_54 = arith.constant 120 : i32
    %180 = tpu.dynamic_rotate %176 by %c120_i32_54 dim 1 : vector<1x128xf32>, i32 -> vector<1x128xf32>
    %181 = arith.mulf %180, %26 : vector<1x128xf32>
    %182 = arith.addf %179, %181 : vector<1x128xf32>
    %183 = arith.mulf %182, %37 : vector<1x128xf32>
    %184 = arith.mulf %151, %83 : vector<1x128xf32>
    %185 = arith.subf %167, %184 : vector<1x128xf32>
    %186 = arith.mulf %151, %151 : vector<1x128xf32>
    %187 = arith.subf %183, %186 : vector<1x128xf32>
    %188 = vector.extract_strided_slice %68 {offsets = [16, 0], sizes = [8, 128], strides = [1, 1]} : vector<24x128xf32> to vector<8x128xf32>
    %cst_55 = arith.constant dense<0.000000e+00> : vector<128xf32>
    %189 = vector.multi_reduction <add>, %188, %cst_55 [0] : vector<8x128xf32> to vector<128xf32>
    %190 = vector.shape_cast %189 : vector<128xf32> to vector<1x128xf32>
    %c1_i32_56 = arith.constant 1 : i32
    %191 = tpu.dynamic_rotate %190 by %c1_i32_56 dim 1 : vector<1x128xf32>, i32 -> vector<1x128xf32>
    %192 = arith.mulf %191, %11 : vector<1x128xf32>
    %193 = arith.addf %190, %192 : vector<1x128xf32>
    %c127_i32_57 = arith.constant 127 : i32
    %194 = tpu.dynamic_rotate %190 by %c127_i32_57 dim 1 : vector<1x128xf32>, i32 -> vector<1x128xf32>
    %195 = arith.mulf %194, %16 : vector<1x128xf32>
    %196 = arith.addf %193, %195 : vector<1x128xf32>
    %c8_i32_58 = arith.constant 8 : i32
    %197 = tpu.dynamic_rotate %196 by %c8_i32_58 dim 1 : vector<1x128xf32>, i32 -> vector<1x128xf32>
    %198 = arith.mulf %197, %21 : vector<1x128xf32>
    %199 = arith.addf %196, %198 : vector<1x128xf32>
    %c120_i32_59 = arith.constant 120 : i32
    %200 = tpu.dynamic_rotate %196 by %c120_i32_59 dim 1 : vector<1x128xf32>, i32 -> vector<1x128xf32>
    %201 = arith.mulf %200, %26 : vector<1x128xf32>
    %202 = arith.addf %199, %201 : vector<1x128xf32>
    %203 = arith.mulf %202, %37 : vector<1x128xf32>
    %204 = arith.mulf %188, %1 : vector<8x128xf32>
    %cst_60 = arith.constant dense<0.000000e+00> : vector<128xf32>
    %205 = vector.multi_reduction <add>, %204, %cst_60 [0] : vector<8x128xf32> to vector<128xf32>
    %206 = vector.shape_cast %205 : vector<128xf32> to vector<1x128xf32>
    %c1_i32_61 = arith.constant 1 : i32
    %207 = tpu.dynamic_rotate %206 by %c1_i32_61 dim 1 : vector<1x128xf32>, i32 -> vector<1x128xf32>
    %208 = arith.mulf %207, %11 : vector<1x128xf32>
    %209 = arith.addf %206, %208 : vector<1x128xf32>
    %c127_i32_62 = arith.constant 127 : i32
    %210 = tpu.dynamic_rotate %206 by %c127_i32_62 dim 1 : vector<1x128xf32>, i32 -> vector<1x128xf32>
    %211 = arith.mulf %210, %16 : vector<1x128xf32>
    %212 = arith.addf %209, %211 : vector<1x128xf32>
    %c8_i32_63 = arith.constant 8 : i32
    %213 = tpu.dynamic_rotate %212 by %c8_i32_63 dim 1 : vector<1x128xf32>, i32 -> vector<1x128xf32>
    %214 = arith.mulf %213, %21 : vector<1x128xf32>
    %215 = arith.addf %212, %214 : vector<1x128xf32>
    %c120_i32_64 = arith.constant 120 : i32
    %216 = tpu.dynamic_rotate %212 by %c120_i32_64 dim 1 : vector<1x128xf32>, i32 -> vector<1x128xf32>
    %217 = arith.mulf %216, %26 : vector<1x128xf32>
    %218 = arith.addf %215, %217 : vector<1x128xf32>
    %219 = arith.mulf %218, %37 : vector<1x128xf32>
    %220 = arith.mulf %188, %188 : vector<8x128xf32>
    %cst_65 = arith.constant dense<0.000000e+00> : vector<128xf32>
    %221 = vector.multi_reduction <add>, %220, %cst_65 [0] : vector<8x128xf32> to vector<128xf32>
    %222 = vector.shape_cast %221 : vector<128xf32> to vector<1x128xf32>
    %c1_i32_66 = arith.constant 1 : i32
    %223 = tpu.dynamic_rotate %222 by %c1_i32_66 dim 1 : vector<1x128xf32>, i32 -> vector<1x128xf32>
    %224 = arith.mulf %223, %11 : vector<1x128xf32>
    %225 = arith.addf %222, %224 : vector<1x128xf32>
    %c127_i32_67 = arith.constant 127 : i32
    %226 = tpu.dynamic_rotate %222 by %c127_i32_67 dim 1 : vector<1x128xf32>, i32 -> vector<1x128xf32>
    %227 = arith.mulf %226, %16 : vector<1x128xf32>
    %228 = arith.addf %225, %227 : vector<1x128xf32>
    %c8_i32_68 = arith.constant 8 : i32
    %229 = tpu.dynamic_rotate %228 by %c8_i32_68 dim 1 : vector<1x128xf32>, i32 -> vector<1x128xf32>
    %230 = arith.mulf %229, %21 : vector<1x128xf32>
    %231 = arith.addf %228, %230 : vector<1x128xf32>
    %c120_i32_69 = arith.constant 120 : i32
    %232 = tpu.dynamic_rotate %228 by %c120_i32_69 dim 1 : vector<1x128xf32>, i32 -> vector<1x128xf32>
    %233 = arith.mulf %232, %26 : vector<1x128xf32>
    %234 = arith.addf %231, %233 : vector<1x128xf32>
    %235 = arith.mulf %234, %37 : vector<1x128xf32>
    %236 = arith.mulf %203, %83 : vector<1x128xf32>
    %237 = arith.subf %219, %236 : vector<1x128xf32>
    %238 = arith.mulf %203, %203 : vector<1x128xf32>
    %239 = arith.subf %235, %238 : vector<1x128xf32>
    %240 = tpu.concatenate %133, %185, %237, %135, %187, %239 in 0 : vector<1x128xf32>, vector<1x128xf32>, vector<1x128xf32>, vector<1x128xf32>, vector<1x128xf32>, vector<1x128xf32> -> vector<6x128xf32>
    %c0_70 = arith.constant 0 : index
    %c0_71 = arith.constant 0 : index
    %241 = vector.load %arg3[%c0_70, %c0_71] : memref<48x6xf32, #tpu.memory_space<vmem>>, vector<48x6xf32>
    %cst_72 = arith.constant dense<0.000000e+00> : vector<48x128xf32>
    %242 = tpu.matmul %241, %240, %cst_72 {dimension_numbers = #tpu.dot_dimension_numbers<[1], [0], [0], [1], [0, 0, 1, 1], [], []>} : vector<48x6xf32>, vector<6x128xf32>, vector<48x128xf32> -> vector<48x128xf32>
    %cst_73 = arith.constant dense<0.000000e+00> : vector<48xf32>
    %243 = vector.multi_reduction <add>, %242, %cst_73 [1] : vector<48x128xf32> to vector<48xf32>
    %244 = vector.shape_cast %243 : vector<48xf32> to vector<48x1xf32>
    %cst_74 = arith.constant 7.812500e-03 : f32
    %245 = vector.broadcast %cst_74 : f32 to vector<48x1xf32>
    %246 = arith.mulf %244, %245 : vector<48x1xf32>
    %247 = arith.mulf %242, %242 : vector<48x128xf32>
    %cst_75 = arith.constant dense<0.000000e+00> : vector<48xf32>
    %248 = vector.multi_reduction <add>, %247, %cst_75 [1] : vector<48x128xf32> to vector<48xf32>
    %249 = vector.shape_cast %248 : vector<48xf32> to vector<48x1xf32>
    %cst_76 = arith.constant 7.812500e-03 : f32
    %250 = vector.broadcast %cst_76 : f32 to vector<48x1xf32>
    %251 = arith.mulf %249, %250 : vector<48x1xf32>
    %252 = arith.mulf %246, %246 : vector<48x1xf32>
    %253 = arith.subf %251, %252 : vector<48x1xf32>
    %cst_77 = arith.constant 0.000000e+00 : f32
    %254 = vector.broadcast %cst_77 : f32 to vector<48x1xf32>
    %255 = arith.maximumf %253, %254 : vector<48x1xf32>
    %256 = vector.broadcast %246 : vector<48x1xf32> to vector<48x128xf32>
    %257 = arith.subf %242, %256 : vector<48x128xf32>
    %cst_78 = arith.constant 9.99999974E-6 : f32
    %258 = vector.broadcast %cst_78 : f32 to vector<48x1xf32>
    %259 = arith.addf %255, %258 : vector<48x1xf32>
    %260 = math.rsqrt %259 : vector<48x1xf32>
    %261 = vector.broadcast %260 : vector<48x1xf32> to vector<48x128xf32>
    %262 = arith.mulf %257, %261 : vector<48x128xf32>
    %cst_79 = arith.constant 0.000000e+00 : f32
    %263 = vector.broadcast %cst_79 : f32 to vector<48x128xf32>
    %264 = arith.maximumf %262, %263 : vector<48x128xf32>
    %c0_80 = arith.constant 0 : index
    %c0_81 = arith.constant 0 : index
    %265 = vector.load %arg4[%c0_80, %c0_81] : memref<48x48xf32, #tpu.memory_space<vmem>>, vector<48x48xf32>
    %cst_82 = arith.constant dense<0.000000e+00> : vector<48x128xf32>
    %266 = tpu.matmul %265, %264, %cst_82 {dimension_numbers = #tpu.dot_dimension_numbers<[1], [0], [0], [1], [0, 0, 1, 1], [], []>} : vector<48x48xf32>, vector<48x128xf32>, vector<48x128xf32> -> vector<48x128xf32>
    %cst_83 = arith.constant dense<0.000000e+00> : vector<48xf32>
    %267 = vector.multi_reduction <add>, %266, %cst_83 [1] : vector<48x128xf32> to vector<48xf32>
    %268 = vector.shape_cast %267 : vector<48xf32> to vector<48x1xf32>
    %cst_84 = arith.constant 7.812500e-03 : f32
    %269 = vector.broadcast %cst_84 : f32 to vector<48x1xf32>
    %270 = arith.mulf %268, %269 : vector<48x1xf32>
    %271 = arith.mulf %266, %266 : vector<48x128xf32>
    %cst_85 = arith.constant dense<0.000000e+00> : vector<48xf32>
    %272 = vector.multi_reduction <add>, %271, %cst_85 [1] : vector<48x128xf32> to vector<48xf32>
    %273 = vector.shape_cast %272 : vector<48xf32> to vector<48x1xf32>
    %cst_86 = arith.constant 7.812500e-03 : f32
    %274 = vector.broadcast %cst_86 : f32 to vector<48x1xf32>
    %275 = arith.mulf %273, %274 : vector<48x1xf32>
    %276 = arith.mulf %270, %270 : vector<48x1xf32>
    %277 = arith.subf %275, %276 : vector<48x1xf32>
    %cst_87 = arith.constant 0.000000e+00 : f32
    %278 = vector.broadcast %cst_87 : f32 to vector<48x1xf32>
    %279 = arith.maximumf %277, %278 : vector<48x1xf32>
    %280 = vector.broadcast %270 : vector<48x1xf32> to vector<48x128xf32>
    %281 = arith.subf %266, %280 : vector<48x128xf32>
    %cst_88 = arith.constant 9.99999974E-6 : f32
    %282 = vector.broadcast %cst_88 : f32 to vector<48x1xf32>
    %283 = arith.addf %279, %282 : vector<48x1xf32>
    %284 = math.rsqrt %283 : vector<48x1xf32>
    %285 = vector.broadcast %284 : vector<48x1xf32> to vector<48x128xf32>
    %286 = arith.mulf %281, %285 : vector<48x128xf32>
    %cst_89 = arith.constant 0.000000e+00 : f32
    %287 = vector.broadcast %cst_89 : f32 to vector<48x128xf32>
    %288 = arith.maximumf %286, %287 : vector<48x128xf32>
    %c0_90 = arith.constant 0 : index
    %c0_91 = arith.constant 0 : index
    %289 = vector.load %arg5[%c0_90, %c0_91] : memref<24x48xf32, #tpu.memory_space<vmem>>, vector<24x48xf32>
    %cst_92 = arith.constant dense<0.000000e+00> : vector<24x128xf32>
    %290 = tpu.matmul %289, %288, %cst_92 {dimension_numbers = #tpu.dot_dimension_numbers<[1], [0], [0], [1], [0, 0, 1, 1], [], []>} : vector<24x48xf32>, vector<48x128xf32>, vector<24x128xf32> -> vector<24x128xf32>
    %291 = vector.extract_strided_slice %290 {offsets = [0, 0], sizes = [8, 128], strides = [1, 1]} : vector<24x128xf32> to vector<8x128xf32>
    %292 = vector.extract_strided_slice %68 {offsets = [0, 0], sizes = [8, 128], strides = [1, 1]} : vector<24x128xf32> to vector<8x128xf32>
    %293 = vector.broadcast %99 : vector<1x128xf32> to vector<8x128xf32>
    %294 = arith.subf %292, %293 : vector<8x128xf32>
    %295 = arith.mulf %291, %294 : vector<8x128xf32>
    %296 = vector.broadcast %83 : vector<1x128xf32> to vector<8x128xf32>
    %297 = arith.addf %295, %296 : vector<8x128xf32>
    %298 = vector.extract_strided_slice %290 {offsets = [8, 0], sizes = [8, 128], strides = [1, 1]} : vector<24x128xf32> to vector<8x128xf32>
    %299 = vector.extract_strided_slice %68 {offsets = [8, 0], sizes = [8, 128], strides = [1, 1]} : vector<24x128xf32> to vector<8x128xf32>
    %300 = vector.broadcast %151 : vector<1x128xf32> to vector<8x128xf32>
    %301 = arith.subf %299, %300 : vector<8x128xf32>
    %302 = arith.mulf %298, %301 : vector<8x128xf32>
    %303 = vector.broadcast %83 : vector<1x128xf32> to vector<8x128xf32>
    %304 = arith.addf %302, %303 : vector<8x128xf32>
    %305 = vector.extract_strided_slice %290 {offsets = [16, 0], sizes = [8, 128], strides = [1, 1]} : vector<24x128xf32> to vector<8x128xf32>
    %306 = vector.extract_strided_slice %68 {offsets = [16, 0], sizes = [8, 128], strides = [1, 1]} : vector<24x128xf32> to vector<8x128xf32>
    %307 = vector.broadcast %203 : vector<1x128xf32> to vector<8x128xf32>
    %308 = arith.subf %306, %307 : vector<8x128xf32>
    %309 = arith.mulf %305, %308 : vector<8x128xf32>
    %310 = vector.broadcast %83 : vector<1x128xf32> to vector<8x128xf32>
    %311 = arith.addf %309, %310 : vector<8x128xf32>
    %312 = tpu.concatenate %297, %304, %311 in 0 : vector<8x128xf32>, vector<8x128xf32>, vector<8x128xf32> -> vector<24x128xf32>
    %c0_93 = arith.constant 0 : index
    %c0_94 = arith.constant 0 : index
    %313 = vector.load %arg6[%c0_93, %c0_94] : memref<8x24xf32, #tpu.memory_space<vmem>>, vector<8x24xf32>
    %cst_95 = arith.constant dense<0.000000e+00> : vector<8x128xf32>
    %314 = tpu.matmul %313, %312, %cst_95 {dimension_numbers = #tpu.dot_dimension_numbers<[1], [0], [0], [1], [0, 0, 1, 1], [], []>} : vector<8x24xf32>, vector<24x128xf32>, vector<8x128xf32> -> vector<8x128xf32>
    %c0_96 = arith.constant 0 : index
    %c0_97 = arith.constant 0 : index
    %315 = vector.load %arg7[%c0_96, %c0_97] : memref<8x1xf32, #tpu.memory_space<vmem>>, vector<8x1xf32>
    %316 = vector.broadcast %315 : vector<8x1xf32> to vector<8x128xf32>
    %317 = arith.addf %314, %316 : vector<8x128xf32>
    %c0_98 = arith.constant 0 : index
    %c0_99 = arith.constant 0 : index
    %318 = vector.load %arg8[%c0_98, %c0_99] : memref<8x128xf32, #tpu.memory_space<vmem>>, vector<8x128xf32>
    tpu.vector_store %arg8[%c0_98, %c0_99], %317 {strides = array<i32>} : memref<8x128xf32, #tpu.memory_space<vmem>>, vector<8x128xf32>,
    return
  }
}

</mosaic_0001>

<bundles_post_ra>
// kernel: enhance_guided_filter.1
= control target key start
LH: loop header
LB: loop body
LE: loop exit
PB: predicated region body
PF: predicated region fallthrough
CT: control target
= control target key end

     0   :  { %v1253_v1 = vmov 0.0   ;;  %s1254_s29 = smov 120   ;;  %s1255_s30 = smov 121   ;;  %vm110_vm0 = vcmask 130048   ;;  %v32_v11 = vlaneseq  ;;  %vm479_vm5 = vcmask 48128   ;;  %s1831_s0 = inlined_call_operand.vmem [shape: f32[16,128], index: 0, kind: input, shape index: {}]   ;;  %s1832_s2 = inlined_call_operand.vmem [shape: f32[24,144], index: 2, kind: input, shape index: {}]   ;;  %s1833_s1 = inlined_call_operand.vmem [shape: f32[8,128], index: 1, kind: input, shape index: {}]   ;;  %s1834_s3 = inlined_call_operand.vmem [shape: f32[48,6], index: 3, kind: input, shape index: {}]   ;;  %s1835_s4 = inlined_call_operand.vmem [shape: f32[48,48], index: 4, kind: input, shape index: {}]   ;;  %s1836_s5 = inlined_call_operand.vmem [shape: f32[24,48], index: 5, kind: input, shape index: {}]   ;;  %s1837_s7 = inlined_call_operand.vmem [shape: f32[8,1], index: 7, kind: input, shape index: {}]   ;;  %s1838_s6 = inlined_call_operand.vmem [shape: f32[8,24], index: 6, kind: input, shape index: {}]   ;;  %s1839_s8 = inlined_call_operand.vmem [shape: f32[8,128], index: 8, kind: output, shape index: {}]  }
   0x1   :  { %v1312_v0 = vld [vmem:[%s1831_s0 + $0x8] sm:$0xff]  ;;  %120 = vmatprep.subr.mxu0 %v1253_v1  ;;  %v1321_v2 = vld [vmem:[%s1831_s0] sm:$0xff]  ;;  %s1256_s11 = smov 127   ;;  %s1257_s12 = smov 1   ;;  %v107_v56 = vld [vmem:[%s1832_s2 + $0x18] sm:$0xff]  ;;  %vm463_vm6 = vcmask 1040384  }
   0x2   :  { %93 = vrot.lane.b32.xlu0 %v1312_v0, %s1254_s29  ;;  %86 = vrot.lane.b32.xlu1 %v1312_v0, %s1255_s30  ;;  %s1258_s0 = smov 7   ;;  %s1259_s13 = smov 8   ;;  %v105_v3 = vld [vmem:[%s1832_s2 + $0x8] sm:$0xff]  ;;  %v1351_v4 = vld [vmem:[%s1833_s1] sm:$0xff]  ;;  %v33_v12 = vand.u32 127, %v32_v11  ;;  %vm465_vm7 = vcmask 1041408  }
   0x3   :  { %s1260_s14 = smov 9   ;;  %1100 = vmatprep.mubr.msk.f32.mxu0 %vm110_vm0, %v105_v3  ;;  %s1261_s17 = smov 119   ;;  %v200_v5 = vrot.slane %v1351_v4, 4  ;;  %v104_v55 = vld [vmem:[%s1832_s2] sm:$0xff]  ;;  %v106_v57 = vld [vmem:[%s1832_s2 + $0x10] sm:$0xff]  ;;  %v109_v58 = vld [vmem:[%s1832_s2 + $0x28] sm:$0xff] }
   0x4   :  { %v35_v13 = vand.u32 63, %v33_v12  ;;  %v34_v14 = vand.u32 7, %v33_v12  ;;  %v108_v59 = vld [vmem:[%s1832_s2 + $0x20] sm:$0xff]  ;;  %vm467_vm8 = vcmask 1042432   ;;  %vm469_vm9 = vcmask 1043456  }
   0x5   :  { %v201_v6 = vadd.f32 %v200_v5, %v1351_v4  ;;  %vm471_vm10 = vcmask 1044480   ;;  %vm498_vm11 = vcmask 1045504   ;;  %vm693_vm12 = vcmask 392192  }
   0x6   :  { %91 = vrot.lane.b32.xlu0 %v1321_v2, %s1254_s29  ;;  %84 = vrot.lane.b32.xlu1 %v1321_v2, %s1255_s30  ;;  %vm42_vm1 = vcmp.lt.s32.totalorder %v35_v13, 56  ;;  %vm36_vm2 = vcmp.ge.s32.totalorder %v34_v14, 1  ;;  %vm38_vm3 = vcmp.le.s32.totalorder %v34_v14, 6  ;;  %vm40_vm4 = vcmp.ge.s32.totalorder %v35_v13, 8 }
   0x7   :  { %v202_v7 = vrot.slane %v201_v6, 2  ;;  %v1363_v15 = vsel %vm42_vm1, 1.0, %v1253_v1  ;;  %v1366_v17 = vsel %vm36_vm2, 1.0, %v1253_v1  ;;  %v1374_v24 = vsel %vm38_vm3, 1.0, %v1253_v1 }
   0x8   :  { %v88_v20 = vmul.f32 %v1363_v15, %v1366_v17  ;;  %v1383_v33 = vsel %vm40_vm4, 1.0, %v1253_v1  ;;  %v101_v49 = vmul.f32 %v1363_v15, %v1374_v24  ;;  %vm1262_vm13 = vmmov 0  }
   0x9   :  { %v203_v8 = vadd.f32 %v202_v7, %v201_v6  ;;  %v69_v37 = vmul.f32 %v1383_v33, %v1374_v24  ;;  %v56_v45 = vmul.f32 %v1383_v33, %v1366_v17  ;;  %vm1021_vm14 = vcmask 195584  }
   0xa   :  { %80 = vrot.lane.b32.xlu0 %v1312_v0, %s1256_s11  ;;  %78 = vrot.lane.b32.xlu1 %v1321_v2, %s1256_s11 }
   0xb   :  { %v204_v9 = vrot.slane %v203_v8, 1 }
   0xd   :  { %v1355_v10 = vadd.f32 %v204_v9, %v203_v8 }
   0xe   :  { %74 = vrot.lane.b32.xlu0 %v1312_v0, %s1257_s12  ;;  %72 = vrot.lane.b32.xlu1 %v1321_v2, %s1257_s12 }
  0x12   :  { %67 = vrot.lane.b32.xlu0 %v1312_v0, %s1258_s0  ;;  %65 = vrot.lane.b32.xlu1 %v1321_v2, %s1258_s0 }
  0x16   :  { %61 = vrot.lane.b32.xlu0 %v1312_v0, %s1259_s13  ;;  %59 = vrot.lane.b32.xlu1 %v1321_v2, %s1259_s13 }
  0x1a   :  { %54 = vrot.lane.b32.xlu0 %v1312_v0, %s1260_s14  ;;  %52 = vrot.lane.b32.xlu1 %v1321_v2, %s1260_s14 }
  0x1e   :  { %99 = vrot.lane.b32.xlu0 %v1312_v0, %s1261_s17  ;;  %97 = vrot.lane.b32.xlu1 %v1321_v2, %s1261_s17 }
  0x22   :  { %206 = vrot.lane.b32.xlu0 %v1355_v10, %s1257_s12  ;;  %210 = vrot.lane.b32.xlu1 %v1355_v10, %s1256_s11 }
  0x74   :  { %v94_v16 = vpop.permute.xlu0 %93  ;;  %v87_v18 = vpop.permute.xlu1 %86 }
  0x75   :  { %v96_v19 = vmul.f32 %v94_v16, %v1363_v15  ;;  %v90_v25 = vmul.f32 %v88_v20, %v87_v18 }
  0x77   :  { %121 = vmatpush1.msra.mxu0 %v96_v19 }
  0x78   :  { %v92_v21 = vpop.permute.xlu0 %91  ;;  %122 = vmatprep.subr.mxu0 %v1253_v1  ;;  %v85_v22 = vpop.permute.xlu1 %84 }
  0x79   :  { %v95_v23 = vmul.f32 %v92_v21, %v1363_v15  ;;  %v89_v26 = vmul.f32 %v88_v20, %v85_v22 }
  0x7b   :  { %123 = vmatpush1.msra.mxu0 %v95_v23 }
  0x7c   :  { %124 = vmatprep.subr.mxu0 %v1253_v1  ;;  %v81_v27 = vpop.permute.xlu0 %80  ;;  %v79_v28 = vpop.permute.xlu1 %78 }
  0x7d   :  { %125 = vmatpush1.msra.mxu0 %v90_v25  ;;  %v83_v29 = vmul.f32 %v81_v27, %v1374_v24  ;;  %v82_v30 = vmul.f32 %v79_v28, %v1374_v24 }
  0x7e   :  { %126 = vmatprep.subr.mxu0 %v1253_v1 }
  0x7f   :  { %127 = vmatpush1.msra.mxu0 %v89_v26 }
  0x80   :  { %128 = vmatprep.subr.mxu0 %v1253_v1  ;;  %v75_v31 = vpop.permute.xlu0 %74  ;;  %v73_v32 = vpop.permute.xlu1 %72 }
  0x81   :  { %129 = vmatpush1.msra.mxu0 %v83_v29  ;;  %v77_v36 = vmul.f32 %v75_v31, %v1366_v17  ;;  %v76_v38 = vmul.f32 %v73_v32, %v1366_v17 }
  0x82   :  { %130 = vmatprep.subr.mxu0 %v1253_v1 }
  0x83   :  { %131 = vmatpush1.msra.mxu0 %v82_v30 }
  0x84   :  { %132 = vmatprep.subr.mxu0 %v1253_v1  ;;  %v68_v34 = vpop.permute.xlu0 %67  ;;  %v66_v35 = vpop.permute.xlu1 %65 }
  0x85   :  { %133 = vmatpush1.msra.mxu0 %v1312_v0  ;;  %v71_v41 = vmul.f32 %v69_v37, %v68_v34  ;;  %v70_v42 = vmul.f32 %v69_v37, %v66_v35 }
  0x86   :  { %134 = vmatprep.subr.mxu0 %v1253_v1 }
  0x87   :  { %135 = vmatpush1.msra.mxu0 %v1321_v2 }
  0x88   :  { %136 = vmatprep.subr.mxu0 %v1253_v1  ;;  %v62_v39 = vpop.permute.xlu0 %61  ;;  %v60_v40 = vpop.permute.xlu1 %59 }
  0x89   :  { %137 = vmatpush1.msra.mxu0 %v77_v36  ;;  %v64_v44 = vmul.f32 %v62_v39, %v1383_v33  ;;  %v63_v47 = vmul.f32 %v60_v40, %v1383_v33 }
  0x8a   :  { %138 = vmatprep.subr.mxu0 %v1253_v1 }
  0x8b   :  { %139 = vmatpush1.msra.mxu0 %v76_v38 }
  0x8c   :  { %140 = vmatprep.subr.mxu0 %v1253_v1  ;;  %v55_v43 = vpop.permute.xlu0 %54  ;;  %v53_v46 = vpop.permute.xlu1 %52 }
  0x8d   :  { %141 = vmatpush1.msra.mxu0 %v71_v41  ;;  %v58_v48 = vmul.f32 %v56_v45, %v55_v43  ;;  %v57_v51 = vmul.f32 %v56_v45, %v53_v46 }
  0x8e   :  { %142 = vmatprep.subr.mxu0 %v1253_v1 }
  0x8f   :  { %143 = vmatpush1.msra.mxu0 %v70_v42 }
  0x90   :  { %144 = vmatprep.subr.mxu0 %v1253_v1  ;;  %v100_v50 = vpop.permute.xlu0 %99  ;;  %v98_v52 = vpop.permute.xlu1 %97 }
  0x91   :  { %145 = vmatpush1.msra.mxu0 %v64_v44  ;;  %v103_v53 = vmul.f32 %v101_v49, %v100_v50  ;;  %v102_v54 = vmul.f32 %v101_v49, %v98_v52 }
  0x92   :  { %146 = vmatprep.subr.mxu0 %v1253_v1 }
  0x93   :  { %147 = vmatpush1.msra.mxu0 %v63_v47 }
  0x94   :  { %148 = vmatprep.subr.mxu0 %v1253_v1 }
  0x95   :  { %149 = vmatpush1.msra.mxu0 %v58_v48 }
  0x96   :  { %150 = vmatprep.subr.mxu0 %v1253_v1 }
  0x97   :  { %151 = vmatpush1.msra.mxu0 %v57_v51 }
  0x98   :  { %180 = vmatprep.subr.mxu0 %v1253_v1 }
  0x99   :  { %181 = vmatpush2.msra.mxu0 %v103_v53 }
  0x9a   :  { %182 = vmatprep.subr.mxu0 %v1253_v1 }
  0x9b   :  { %183 = vmatpush2.msra.mxu0 %v102_v54 }
  0x9c   :  { %185 = vmatmul.mubr.f32.vlgmr.msra.gmra.mxu0 %v104_v55 }
  0x9d   :  { %1101 = vmatprep.mubr.msk.f32.mxu0 %vm110_vm0, %v107_v56 }
  0xa0   :  { %190 = vmatmul.mubr.f32.gmra.mxu0 %v106_v57 }
  0xa1   :  { %1102 = vmatprep.mubr.msk.f32.mxu0 %vm110_vm0, %v109_v58 }
  0xa4   :  { %195 = vmatmul.mubr.f32.gmra.mxu0 %v108_v59 }
 0x15c   :  { %v1426_v60 = vpop.f32.mrf.mxu0 }
 0x15d   :  { %v223_v61 = vrot.slane %v1426_v60, 4  ;;  %v246_v62 = vmul.f32 %v1426_v60, %v1351_v4  ;;  %v270_v63 = vmul.f32 %v1426_v60, %v1426_v60 }
 0x15e   :  { %v188_v0 = vpop.f32.mrf.mxu0 }
 0x15f   :  { %v224_v2 = vadd.f32 %v223_v61, %v1426_v60  ;;  %v271_v3 = vrot.slane %v270_v63, 4  ;;  %v247_v5 = vrot.slane %v246_v62, 4 }
 0x160   :  { %v1434_v6 = vpop.f32.mrf.mxu0 }
 0x161   :  { %v298_v7 = vrot.slane %v1434_v6, 4  ;;  %v321_v8 = vmul.f32 %v1434_v6, %v1351_v4  ;;  %v345_v9 = vmul.f32 %v1434_v6, %v1434_v6  ;;  %v225_v12 = vrot.slane %v224_v2, 2 }
 0x162   :  { %v193_v13 = vpop.f32.mrf.mxu0  ;;  %v272_v14 = vadd.f32 %v271_v3, %v270_v63  ;;  %v248_v16 = vadd.f32 %v247_v5, %v246_v62  ;;  %v207_v5 = vpop.permute.xlu0 %206 }
 0x163   :  { %v226_v18 = vadd.f32 %v225_v12, %v224_v2  ;;  %v322_v19 = vrot.slane %v321_v8, 4  ;;  %v299_v20 = vadd.f32 %v298_v7, %v1434_v6  ;;  %v346_v27 = vrot.slane %v345_v9, 4  ;;  %v211_v12 = vpop.permute.xlu1 %210 }
 0x164   :  { %v1442_v21 = vpop.f32.mrf.mxu0  ;;  %v273_v22 = vrot.slane %v272_v14, 2  ;;  %v249_v23 = vrot.slane %v248_v16, 2 }
 0x165   :  { %v227_v25 = vrot.slane %v226_v18, 1  ;;  %v373_v26 = vrot.slane %v1442_v21, 4  ;;  %v396_v28 = vmul.f32 %v1442_v21, %v1351_v4  ;;  %v323_v32 = vadd.f32 %v322_v19, %v321_v8 }
 0x166   :  { %v274_v29 = vadd.f32 %v273_v22, %v272_v14  ;;  %v250_v30 = vadd.f32 %v249_v23, %v248_v16  ;;  %v198_v31 = vpop.f32.mrf.mxu0  ;;  %v300_v35 = vrot.slane %v299_v20, 2  ;;  %v420_v39 = vmul.f32 %v1442_v21, %v1442_v21 }
 0x167   :  { %v1447_v34 = vadd.f32 %v227_v25, %v226_v18  ;;  %v324_v38 = vrot.slane %v323_v32, 2  ;;  %v347_v4 = vadd.f32 %v346_v27, %v345_v9  ;;  %v374_v40 = vadd.f32 %v373_v26, %v1442_v21 }
 0x168   :  { %v275_v36 = vrot.slane %v274_v29, 1  ;;  %v251_v37 = vrot.slane %v250_v30, 1  ;;  %v397_v41 = vrot.slane %v396_v28, 4  ;;  %v301_v45 = vadd.f32 %v300_v35, %v299_v20 }
 0x169   :  { %233 = vrot.lane.b32.xlu1 %v1447_v34, %s1256_s11  ;;  %229 = vrot.lane.b32.xlu0 %v1447_v34, %s1257_s12  ;;  %v325_v44 = vadd.f32 %v324_v38, %v323_v32  ;;  %v348_v46 = vrot.slane %v347_v4, 2  ;;  %v375_v47 = vrot.slane %v374_v40, 2  ;;  %v421_v51 = vrot.slane %v420_v39, 4 }
 0x16a   :  { %v1456_v42 = vadd.f32 %v275_v36, %v274_v29  ;;  %v1458_v43 = vadd.f32 %v251_v37, %v250_v30  ;;  %v302_v49 = vrot.slane %v301_v45, 1  ;;  %v398_v50 = vadd.f32 %v397_v41, %v396_v28 }
 0x16b   :  { %v326_v48 = vrot.slane %v325_v44, 1  ;;  %v349_v52 = vadd.f32 %v348_v46, %v347_v4  ;;  %v376_v53 = vadd.f32 %v375_v47, %v374_v40  ;;  %v422_v57 = vadd.f32 %v421_v51, %v420_v39 }
 0x16c   :  { %v303_v55 = vadd.f32 %v302_v49, %v301_v45  ;;  %v399_v56 = vrot.slane %v398_v50, 2  ;;  %v208_v9 = vmul.f32 %v207_v5, %v1366_v17  ;;  %v212_v16 = vmul.f32 %v211_v12, %v1374_v24 }
 0x16d   :  { %277 = vrot.lane.b32.xlu1 %v1456_v42, %s1257_s12  ;;  %253 = vrot.lane.b32.xlu0 %v1458_v43, %s1257_s12  ;;  %v1468_v54 = vadd.f32 %v326_v48, %v325_v44  ;;  %v350_v58 = vrot.slane %v349_v52, 1  ;;  %v377_v59 = vrot.slane %v376_v53, 1  ;;  %v423_v62 = vrot.slane %v422_v57, 2 }
 0x16e   :  { %v400_v61 = vadd.f32 %v399_v56, %v398_v50  ;;  %v209_v14 = vadd.f32 %v208_v9, %v1355_v10 }
 0x16f   :  { %v1476_v63 = vadd.f32 %v350_v58, %v349_v52  ;;  %v1478_v0 = vadd.f32 %v377_v59, %v376_v53  ;;  %v424_v3 = vadd.f32 %v423_v62, %v422_v57 }
 0x170   :  { %v401_v2 = vrot.slane %v400_v61, 1  ;;  %v1499_v18 = vadd.f32 %v212_v16, %v209_v14 }
 0x171   :  { %257 = vrot.lane.b32.xlu1 %v1458_v43, %s1256_s11  ;;  %281 = vrot.lane.b32.xlu0 %v1456_v42, %s1256_s11  ;;  %v425_v8 = vrot.slane %v424_v3, 1 }
 0x172   :  { %v1484_v7 = vadd.f32 %v401_v2, %v400_v61 }
 0x173   :  { %v1491_v13 = vadd.f32 %v425_v8, %v424_v3 }
 0x175   :  { %328 = vrot.lane.b32.xlu0 %v1468_v54, %s1257_s12  ;;  %304 = vrot.lane.b32.xlu1 %v303_v55, %s1257_s12 }
 0x179   :  { %332 = vrot.lane.b32.xlu0 %v1468_v54, %s1256_s11  ;;  %308 = vrot.lane.b32.xlu1 %v303_v55, %s1256_s11 }
 0x17d   :  { %352 = vrot.lane.b32.xlu1 %v1476_v63, %s1257_s12  ;;  %379 = vrot.lane.b32.xlu0 %v1478_v0, %s1257_s12 }
 0x181   :  { %383 = vrot.lane.b32.xlu1 %v1478_v0, %s1256_s11  ;;  %403 = vrot.lane.b32.xlu0 %v1484_v7, %s1257_s12 }
 0x185   :  { %427 = vrot.lane.b32.xlu1 %v1491_v13, %s1257_s12  ;;  %407 = vrot.lane.b32.xlu0 %v1484_v7, %s1256_s11 }
 0x189   :  { %431 = vrot.lane.b32.xlu1 %v1491_v13, %s1256_s11  ;;  %356 = vrot.lane.b32.xlu0 %v1476_v63, %s1256_s11 }
 0x18d   :  { %214 = vrot.lane.b32.xlu0 %v1499_v18, %s1259_s13  ;;  %218 = vrot.lane.b32.xlu1 %v1499_v18, %s1254_s29 }
 0x1db   :  { %v234_v19 = vpop.permute.xlu1 %233  ;;  %v230_v20 = vpop.permute.xlu0 %229 }
 0x1dc   :  { %v231_v10 = vmul.f32 %v230_v20, %v1366_v17  ;;  %v235_v22 = vmul.f32 %v234_v19, %v1374_v24  ;;  %v473_v20 = vld [vmem:[%s1834_s3] sm:$0xff] }
 0x1dd   :  { %1154 = vmatprep.mubr.msk.f32.mxu1 %vm479_vm5, %v473_v20 }
 0x1de   :  { %v232_v23 = vadd.f32 %v231_v10, %v1447_v34 }
 0x1df   :  { %v278_v25 = vpop.permute.xlu1 %277  ;;  %v254_v26 = vpop.permute.xlu0 %253 }
 0x1e0   :  { %v279_v27 = vmul.f32 %v278_v25, %v1366_v17  ;;  %v255_v28 = vmul.f32 %v254_v26, %v1366_v17  ;;  %v1514_v29 = vadd.f32 %v235_v22, %v232_v23  ;;  %v44_v22 = vadd.f32 1.0, %v1366_v17 }
 0x1e2   :  { %241 = vrot.lane.b32.xlu1 %v1514_v29, %s1254_s29  ;;  %237 = vrot.lane.b32.xlu0 %v1514_v29, %s1259_s13  ;;  %v280_v32 = vadd.f32 %v279_v27, %v1456_v42  ;;  %v256_v34 = vadd.f32 %v255_v28, %v1458_v43  ;;  %v45_v26 = vadd.f32 %v44_v22, %v1374_v24  ;;  %v47_v27 = vadd.f32 1.0, %v1383_v33 }
 0x1e3   :  { %v258_v30 = vpop.permute.xlu1 %257  ;;  %v282_v31 = vpop.permute.xlu0 %281 }
 0x1e4   :  { %v259_v35 = vmul.f32 %v258_v30, %v1374_v24  ;;  %v283_v36 = vmul.f32 %v282_v31, %v1374_v24  ;;  %v46_v31 = vmul.f32 8.0, %v45_v26 }
 0x1e6   :  { %v1524_v37 = vadd.f32 %v259_v35, %v256_v34  ;;  %v1526_v38 = vadd.f32 %v283_v36, %v280_v32  ;;  %v48_v32 = vadd.f32 %v47_v27, %v1363_v15 }
 0x1e7   :  { %v305_v39 = vpop.permute.xlu1 %304  ;;  %v329_v4 = vpop.permute.xlu0 %328 }
 0x1e8   :  { %v306_v40 = vmul.f32 %v305_v39, %v1366_v17  ;;  %v330_v41 = vmul.f32 %v329_v4, %v1366_v17  ;;  %261 = vrot.lane.b32.xlu0 %v1524_v37, %s1259_s13  ;;  %285 = vrot.lane.b32.xlu1 %v1526_v38, %s1259_s13  ;;  %v49_v36 = vmul.f32 %v48_v32, %v46_v31 }
 0x1ea   :  { %v307_v42 = vadd.f32 %v306_v40, %v303_v55  ;;  %v331_v45 = vadd.f32 %v330_v41, %v1468_v54  ;;  %1227 = vrcp.f32 %v49_v36 }
 0x1eb   :  { %v309_v43 = vpop.permute.xlu1 %308  ;;  %v333_v44 = vpop.permute.xlu0 %332 }
 0x1ec   :  { %v310_v46 = vmul.f32 %v309_v43, %v1374_v24  ;;  %v334_v47 = vmul.f32 %v333_v44, %v1374_v24  ;;  %289 = vrot.lane.b32.xlu0 %v1526_v38, %s1254_s29  ;;  %265 = vrot.lane.b32.xlu1 %v1524_v37, %s1254_s29 }
 0x1ee   :  { %v1541_v48 = vadd.f32 %v310_v46, %v307_v42  ;;  %v1543_v49 = vadd.f32 %v334_v47, %v331_v45 }
 0x1ef   :  { %v353_v50 = vpop.permute.xlu1 %352  ;;  %v380_v51 = vpop.permute.xlu0 %379 }
 0x1f0   :  { %v381_v52 = vmul.f32 %v380_v51, %v1366_v17  ;;  %312 = vrot.lane.b32.xlu1 %v1541_v48, %s1259_s13  ;;  %336 = vrot.lane.b32.xlu0 %v1543_v49, %s1259_s13  ;;  %v354_v61 = vmul.f32 %v353_v50, %v1366_v17 }
 0x1f2   :  { %v382_v55 = vadd.f32 %v381_v52, %v1478_v0  ;;  %v355_v8 = vadd.f32 %v354_v61, %v1476_v63 }
 0x1f3   :  { %v384_v53 = vpop.permute.xlu1 %383  ;;  %v404_v54 = vpop.permute.xlu0 %403 }
 0x1f4   :  { %v385_v56 = vmul.f32 %v384_v53, %v1374_v24  ;;  %v405_v57 = vmul.f32 %v404_v54, %v1366_v17  ;;  %316 = vrot.lane.b32.xlu1 %v1541_v48, %s1254_s29  ;;  %340 = vrot.lane.b32.xlu0 %v1543_v49, %s1254_s29 }
 0x1f6   :  { %v1557_v58 = vadd.f32 %v385_v56, %v382_v55  ;;  %v406_v62 = vadd.f32 %v405_v57, %v1484_v7 }
 0x1f7   :  { %v408_v59 = vpop.permute.xlu0 %407  ;;  %v428_v0 = vpop.permute.xlu1 %427 }
 0x1f8   :  { %v409_v2 = vmul.f32 %v408_v59, %v1374_v24  ;;  %387 = vrot.lane.b32.xlu0 %v1557_v58, %s1259_s13  ;;  %v429_v7 = vmul.f32 %v428_v0, %v1366_v17  ;;  %v1605_v54 = vpop.eup %1227 }
 0x1fa   :  { %v1564_v3 = vadd.f32 %v409_v2, %v406_v62  ;;  %v430_v63 = vadd.f32 %v429_v7, %v1491_v13 }
 0x1fb   :  { %v357_v5 = vpop.permute.xlu0 %356  ;;  %v432_v14 = vpop.permute.xlu1 %431 }
 0x1fc   :  { %v358_v9 = vmul.f32 %v357_v5, %v1374_v24  ;;  %411 = vrot.lane.b32.xlu0 %v1564_v3, %s1259_s13  ;;  %v433_v16 = vmul.f32 %v432_v14, %v1374_v24 }
 0x1fe   :  { %v1570_v12 = vadd.f32 %v358_v9, %v355_v8  ;;  %v1583_v19 = vadd.f32 %v433_v16, %v430_v63 }
 0x1ff   :  { %v215_v13 = vpop.permute.xlu0 %214  ;;  %v219_v10 = vpop.permute.xlu1 %218 }
 0x200   :  { %415 = vrot.lane.b32.xlu0 %v1564_v3, %s1254_s29  ;;  %360 = vrot.lane.b32.xlu1 %v1570_v12, %s1259_s13  ;;  %v216_v17 = vmul.f32 %v215_v13, %v1383_v33  ;;  %v220_v45 = vmul.f32 %v219_v10, %v1363_v15 }
 0x202   :  { %v217_v44 = vadd.f32 %v216_v17, %v1499_v18 }
 0x204   :  { %364 = vrot.lane.b32.xlu0 %v1570_v12, %s1254_s29  ;;  %391 = vrot.lane.b32.xlu1 %v1557_v58, %s1254_s29  ;;  %v221_v53 = vadd.f32 %v220_v45, %v217_v44 }
 0x206   :  { %v1617_v0 = vmul.f32 %v1605_v54, %v221_v53 }
 0x208   :  { %435 = vrot.lane.b32.xlu1 %v1583_v19, %s1259_s13 }
 0x20c   :  { %439 = vrot.lane.b32.xlu1 %v1583_v19, %s1254_s29 }
 0x254   :  { %v242_v23 = vpop.permute.xlu1 %241  ;;  %v238_v25 = vpop.permute.xlu0 %237 }
 0x255   :  { %v239_v47 = vmul.f32 %v238_v25, %v1383_v33  ;;  %v243_v5 = vmul.f32 %v242_v23, %v1363_v15 }
 0x257   :  { %v240_v57 = vadd.f32 %v239_v47, %v1514_v29 }
 0x259   :  { %v244_v16 = vadd.f32 %v243_v5, %v240_v57 }
 0x25a   :  { %v286_v28 = vpop.permute.xlu1 %285  ;;  %v262_v30 = vpop.permute.xlu0 %261 }
 0x25b   :  { %v287_v55 = vmul.f32 %v286_v28, %v1383_v33  ;;  %v263_v18 = vmul.f32 %v262_v30, %v1383_v33 }
 0x25d   :  { %v288_v9 = vadd.f32 %v287_v55, %v1526_v38  ;;  %v264_v20 = vadd.f32 %v263_v18, %v1524_v37  ;;  %v1636_v37 = vmul.f32 %v1605_v54, %v244_v16 }
 0x25e   :  { %v266_v34 = vpop.permute.xlu1 %265  ;;  %v290_v35 = vpop.permute.xlu0 %289 }
 0x25f   :  { %v291_v59 = vmul.f32 %v290_v35, %v1363_v15  ;;  %v267_v14 = vmul.f32 %v266_v34, %v1363_v15 }
 0x261   :  { %v292_v13 = vadd.f32 %v291_v59, %v288_v9  ;;  %v268_v28 = vadd.f32 %v267_v14, %v264_v20  ;;  %v476_v9 = vld [vmem:[%s1834_s3 + $0x18] sm:$0xff]  ;;  %v477_v14 = vld [vmem:[%s1834_s3 + $0x20] sm:$0xff] }
 0x262   :  { %v313_v39 = vpop.permute.xlu1 %312  ;;  %v337_v4 = vpop.permute.xlu0 %336 }
 0x263   :  { %v314_v42 = vmul.f32 %v313_v39, %v1383_v33  ;;  %v338_v50 = vmul.f32 %v337_v4, %v1383_v33 }
 0x265   :  { %v315_v46 = vadd.f32 %v314_v42, %v1541_v48  ;;  %v339_v48 = vadd.f32 %v338_v50, %v1543_v49  ;;  %v294_v42 = vmul.f32 %v1636_v37, %v1617_v0 }
 0x266   :  { %v341_v40 = vpop.permute.xlu0 %340  ;;  %v317_v41 = vpop.permute.xlu1 %316 }
 0x267   :  { %v318_v24 = vmul.f32 %v317_v41, %v1363_v15  ;;  %v342_v56 = vmul.f32 %v341_v40, %v1363_v15  ;;  %v269_v40 = vmul.f32 %v1605_v54, %v268_v28  ;;  %v687_v28 = vld [vmem:[%s1835_s4] sm:$0xff] }
 0x269   :  { %v319_v51 = vadd.f32 %v318_v24, %v315_v46  ;;  %v343_v7 = vadd.f32 %v342_v56, %v339_v48  ;;  %v295_v50 = vsub.f32 %v269_v40, %v294_v42 }
 0x26a   :  { %v388_v43 = vpop.permute.xlu0 %387 }
 0x26b   :  { %v1614_v61 = vmul.f32 %v1605_v54, %v319_v51  ;;  %v389_v8 = vmul.f32 %v388_v43, %v1383_v33  ;;  %v344_v30 = vmul.f32 %v1605_v54, %v343_v7  ;;  %v478_v7 = vld [vmem:[%s1834_s3 + $0x28] sm:$0xff] }
 0x26d   :  { %v369_v10 = vmul.f32 %v1614_v61, %v1617_v0  ;;  %v390_v25 = vadd.f32 %v389_v8, %v1557_v58  ;;  %v293_v58 = vmul.f32 %v1605_v54, %v292_v13  ;;  %v371_v51 = vmul.f32 %v1614_v61, %v1614_v61 }
 0x26e   :  { %v412_v52 = vpop.permute.xlu0 %411 }
 0x26f   :  { %v413_v29 = vmul.f32 %v412_v52, %v1383_v33  ;;  %v370_v35 = vsub.f32 %v344_v30, %v369_v10 }
 0x271   :  { %v414_v38 = vadd.f32 %v413_v29, %v1564_v3  ;;  %v449_v24 = vrot.slane %v370_v35, 7  ;;  %v474_v29 = vld [vmem:[%s1834_s3 + $0x8] sm:$0xff] }
 0x272   :  { %v361_v62 = vpop.permute.xlu1 %360  ;;  %v416_v2 = vpop.permute.xlu0 %415 }
 0x273   :  { %v362_v49 = vmul.f32 %v361_v62, %v1383_v33  ;;  %v417_v63 = vmul.f32 %v416_v2, %v1363_v15  ;;  %v464_v56 = vsel %vm463_vm6, %v295_v50, %v449_v24 }
 0x275   :  { %v363_v31 = vadd.f32 %v362_v49, %v1570_v12  ;;  %v418_v32 = vadd.f32 %v417_v63, %v414_v38  ;;  %v296_v12 = vmul.f32 %v1636_v37, %v1636_v37 }
 0x276   :  { %v392_v22 = vpop.permute.xlu1 %391  ;;  %v365_v23 = vpop.permute.xlu0 %364 }
 0x277   :  { %v393_v26 = vmul.f32 %v392_v22, %v1363_v15  ;;  %v366_v27 = vmul.f32 %v365_v23, %v1363_v15  ;;  %v419_v17 = vmul.f32 %v1605_v54, %v418_v32  ;;  %v297_v45 = vsub.f32 %v293_v58, %v296_v12 }
 0x279   :  { %v394_v34 = vadd.f32 %v393_v26, %v390_v25  ;;  %v367_v36 = vadd.f32 %v366_v27, %v363_v31  ;;  %v455_v57 = vrot.slane %v297_v45, 5 }
 0x27a   :  { %v436_v39 = vpop.permute.xlu1 %435 }
 0x27b   :  { %v1640_v3 = vmul.f32 %v1605_v54, %v394_v34  ;;  %v437_v4 = vmul.f32 %v436_v39, %v1383_v33  ;;  %v368_v43 = vmul.f32 %v1605_v54, %v367_v36 }
 0x27d   :  { %v444_v41 = vmul.f32 %v1640_v3, %v1617_v0  ;;  %v438_v46 = vadd.f32 %v437_v4, %v1583_v19  ;;  %v372_v55 = vsub.f32 %v368_v43, %v371_v51  ;;  %v446_v59 = vmul.f32 %v1640_v3, %v1640_v3 }
 0x27e   :  { %v440_v44 = vpop.permute.xlu1 %439 }
 0x27f   :  { %v445_v33 = vsub.f32 %v419_v17, %v444_v41  ;;  %v441_v47 = vmul.f32 %v440_v44, %v1363_v15  ;;  %v458_v15 = vrot.slane %v372_v55, 4 }
 0x281   :  { %v452_v52 = vrot.slane %v445_v33, 6  ;;  %v442_v53 = vadd.f32 %v441_v47, %v438_v46 }
 0x283   :  { %v443_v18 = vmul.f32 %v1605_v54, %v442_v53  ;;  %v466_v48 = vsel %vm465_vm7, %v464_v56, %v452_v52  ;;  %v475_v54 = vld [vmem:[%s1834_s3 + $0x10] sm:$0xff] }
 0x284   :  { %v468_v62 = vsel %vm467_vm8, %v466_v48, %v455_v57 }
 0x285   :  { %v447_v19 = vsub.f32 %v443_v18, %v446_v59  ;;  %v470_v5 = vsel %vm469_vm9, %v468_v62, %v458_v15 }
 0x287   :  { %v461_v2 = vrot.slane %v447_v19, 3 }
 0x289   :  { %v472_v8 = vsel %vm471_vm10, %v470_v5, %v461_v2 }
 0x28a   :  { %1152 = vmatprep.subr.msk.mxu1 %vm498_vm11, %v472_v8 }
 0x28b   :  { %1153 = vmatpush3.msk.msra.mxu1 %vm498_vm11, %v472_v8 }
 0x28c   :  { %1155 = vmatmul.mubr.msk.f32.vlgmr.msra.gmra.mxu1 %vm479_vm5, %v474_v29 }
 0x28d   :  { %1157 = vmatprep.mubr.msk.f32.mxu1 %vm479_vm5, %v475_v54 }
 0x290   :  { %1158 = vmatmul.mubr.msk.f32.gmra.mxu1 %vm479_vm5, %v476_v9 }
 0x291   :  { %1160 = vmatprep.mubr.msk.f32.mxu1 %vm479_vm5, %v477_v14 }
 0x294   :  { %1161 = vmatmul.mubr.msk.f32.gmra.mxu1 %vm479_vm5, %v478_v7 }
 0x295   :  { %1175 = vmatprep.mubr.msk.f32.mxu1 %vm693_vm12, %v687_v28 }
 0x34c   :  { %v1679_v49 = vpop.f32.mrf.mxu1 }
 0x34d   :  { %v616_v26 = vmul.f32 %v1679_v49, %v1679_v49 }
 0x34e   :  { %v1681_v16 = vpop.f32.mrf.mxu1 }
 0x34f   :  { %v615_v27 = vmul.f32 %v1681_v16, %v1681_v16 }
 0x350   :  { %v1683_v63 = vpop.f32.mrf.mxu1 }
 0x351   :  { %603 = vadd.xlane.f32.xlu0 %v1683_v63  ;;  %v618_v20 = vmul.f32 %v1683_v63, %v1683_v63 }
 0x352   :  { %v1688_v13 = vpop.f32.mrf.mxu1 }
 0x353   :  { %627 = vadd.xlane.f32.xlu1 %v618_v20  ;;  %v617_v38 = vmul.f32 %v1688_v13, %v1688_v13 }
 0x354   :  { %v1690_v10 = vpop.f32.mrf.mxu1 }
 0x355   :  { %601 = vadd.xlane.f32.xlu0 %v1688_v13  ;;  %v620_v25 = vmul.f32 %v1690_v10, %v1690_v10 }
 0x356   :  { %v1693_v22 = vpop.f32.mrf.mxu1 }
 0x357   :  { %605 = vadd.xlane.f32.xlu1 %v1693_v22  ;;  %v619_v23 = vmul.f32 %v1693_v22, %v1693_v22 }
 0x359   :  { %607 = vadd.xlane.f32.xlu0 %v1690_v10 }
 0x35b   :  { %629 = vadd.xlane.f32.xlu1 %v619_v23 }
 0x35d   :  { %631 = vadd.xlane.f32.xlu0 %v620_v25 }
 0x35f   :  { %625 = vadd.xlane.f32.xlu1 %v617_v38 }
 0x361   :  { %599 = vadd.xlane.f32.xlu0 %v1679_v49 }
 0x363   :  { %623 = vadd.xlane.f32.xlu1 %v616_v26 }
 0x365   :  { %597 = vadd.xlane.f32.xlu0 %v1681_v16 }
 0x369   :  { %621 = vadd.xlane.f32.xlu0 %v615_v27 }
 0x3da   :  { %v604_v30 = vpop.xlane.xlu0 %603 }
 0x3db   :  { %v1713_v31 = vmul.f32 0.0078125, %v604_v30 }
 0x3dc   :  { %v628_v32 = vpop.xlane.xlu1 %627 }
 0x3dd   :  { %v642_v34 = vmul.f32 %v1713_v31, %v1713_v31  ;;  %v636_v35 = vmul.f32 0.0078125, %v628_v32 }
 0x3de   :  { %v602_v36 = vpop.xlane.xlu0 %601 }
 0x3df   :  { %v648_v4 = vsub.f32 %v636_v35, %v642_v34  ;;  %v611_v42 = vmul.f32 0.0078125, %v602_v36  ;;  %v660_v36 = vsub.f32 %v1683_v63, %v1713_v31 }
 0x3e0   :  { %v606_v39 = vpop.xlane.xlu1 %605 }
 0x3e1   :  { %v613_v58 = vmul.f32 0.0078125, %v606_v39  ;;  %v654_v43 = vmax.f32 %v648_v4, 0.0  ;;  %v641_v50 = vmul.f32 %v611_v42, %v611_v42 }
 0x3e2   :  { %v608_v40 = vpop.xlane.xlu0 %607 }
 0x3e3   :  { %v643_v12 = vmul.f32 %v613_v58, %v613_v58  ;;  %v614_v17 = vmul.f32 0.0078125, %v608_v40  ;;  %v666_v55 = vadd.f32 1e-05, %v654_v43  ;;  %v661_v32 = vsub.f32 %v1693_v22, %v613_v58 }
 0x3e4   :  { %v630_v41 = vpop.xlane.xlu1 %629 }
 0x3e5   :  { %v637_v24 = vmul.f32 0.0078125, %v630_v41  ;;  %v644_v45 = vmul.f32 %v614_v17, %v614_v17  ;;  %v662_v34 = vsub.f32 %v1690_v10, %v614_v17 }
 0x3e6   :  { %v632_v44 = vpop.xlane.xlu0 %631 }
 0x3e7   :  { %v649_v33 = vsub.f32 %v637_v24, %v643_v12  ;;  %v638_v46 = vmul.f32 0.0078125, %v632_v44  ;;  %v659_v12 = vsub.f32 %v1688_v13, %v611_v42 }
 0x3e8   :  { %v626_v47 = vpop.xlane.xlu1 %625 }
 0x3e9   :  { %v655_v51 = vmax.f32 %v649_v33, 0.0  ;;  %v650_v52 = vsub.f32 %v638_v46, %v644_v45  ;;  %v635_v53 = vmul.f32 0.0078125, %v626_v47  ;;  %v689_v46 = vld [vmem:[%s1835_s4 + $0x10] sm:$0xff]  ;;  %v691_v47 = vld [vmem:[%s1835_s4 + $0x20] sm:$0xff] }
 0x3ea   :  { %v600_v56 = vpop.xlane.xlu0 %599 }
 0x3eb   :  { %v667_v57 = vadd.f32 1e-05, %v655_v51  ;;  %v656_v18 = vmax.f32 %v650_v52, 0.0  ;;  %v647_v59 = vsub.f32 %v635_v53, %v641_v50  ;;  %v610_v48 = vmul.f32 0.0078125, %v600_v56  ;;  %v692_v50 = vld [vmem:[%s1835_s4 + $0x28] sm:$0xff] }
 0x3ec   :  { %v624_v19 = vpop.xlane.xlu1 %623 }
 0x3ed   :  { %1229 = vrsqrt.f32 %v667_v57  ;;  %v668_v62 = vadd.f32 1e-05, %v656_v18  ;;  %v653_v15 = vmax.f32 %v647_v59, 0.0  ;;  %v640_v2 = vmul.f32 %v610_v48, %v610_v48 }
 0x3ee   :  { %1231 = vrsqrt.f32 %v666_v55  ;;  %v634_v5 = vmul.f32 0.0078125, %v624_v19  ;;  %v598_v8 = vpop.xlane.xlu0 %597  ;;  %v658_v45 = vsub.f32 %v1679_v49, %v610_v48  ;;  %v688_v49 = vld [vmem:[%s1835_s4 + $0x8] sm:$0xff] }
 0x3ef   :  { %1233 = vrsqrt.f32 %v668_v62  ;;  %v665_v29 = vadd.f32 1e-05, %v653_v15  ;;  %v609_v54 = vmul.f32 0.0078125, %v598_v8 }
 0x3f0   :  { %v646_v9 = vsub.f32 %v634_v5, %v640_v2 }
 0x3f1   :  { %1235 = vrsqrt.f32 %v665_v29  ;;  %v639_v20 = vmul.f32 %v609_v54, %v609_v54  ;;  %v657_v31 = vsub.f32 %v1681_v16, %v609_v54  ;;  %v690_v16 = vld [vmem:[%s1835_s4 + $0x18] sm:$0xff] }
 0x3f2   :  { %v652_v14 = vmax.f32 %v646_v9, 0.0  ;;  %v622_v7 = vpop.xlane.xlu0 %621 }
 0x3f3   :  { %v633_v23 = vmul.f32 0.0078125, %v622_v7 }
 0x3f4   :  { %v664_v25 = vadd.f32 1e-05, %v652_v14 }
 0x3f5   :  { %v645_v38 = vsub.f32 %v633_v23, %v639_v20 }
 0x3f6   :  { %1237 = vrsqrt.f32 %v664_v25 }
 0x3f7   :  { %v651_v26 = vmax.f32 %v645_v38, 0.0 }
 0x3f9   :  { %v663_v27 = vadd.f32 1e-05, %v651_v26 }
 0x3fa   :  { %v1230_v28 = vpop.eup %1229 }
 0x3fb   :  { %v1232_v30 = vpop.eup %1231  ;;  %1239 = vrsqrt.f32 %v663_v27  ;;  %v679_v4 = vmul.f32 %v1230_v28, %v661_v32 }
 0x3fc   :  { %v1234_v35 = vpop.eup %1233  ;;  %v678_v24 = vmul.f32 %v1232_v30, %v660_v36 }
 0x3fd   :  { %v680_v39 = vmul.f32 %v1234_v35, %v662_v34  ;;  %v685_v43 = vmax.f32 %v679_v4, 0.0 }
 0x3fe   :  { %v1236_v40 = vpop.eup %1235  ;;  %v684_v10 = vmax.f32 %v678_v24, 0.0 }
 0x3ff   :  { %v686_v41 = vmax.f32 %v680_v39, 0.0  ;;  %v677_v44 = vmul.f32 %v1236_v40, %v659_v12 }
 0x401   :  { %1163 = vmatprep.subr.mxu1 %v686_v41  ;;  %v683_v63 = vmax.f32 %v677_v44, 0.0 }
 0x402   :  { %1164 = vmatpush3.msra.mxu1 %v686_v41 }
 0x403   :  { %v1238_v22 = vpop.eup %1237  ;;  %1165 = vmatprep.subr.mxu1 %v685_v43 }
 0x404   :  { %1166 = vmatpush3.msra.mxu1 %v685_v43  ;;  %v676_v58 = vmul.f32 %v1238_v22, %v658_v45 }
 0x405   :  { %1167 = vmatprep.subr.mxu1 %v684_v10 }
 0x406   :  { %1168 = vmatpush3.msra.mxu1 %v684_v10  ;;  %v682_v13 = vmax.f32 %v676_v58, 0.0 }
 0x407   :  { %1169 = vmatprep.subr.mxu1 %v683_v63 }
 0x408   :  { %v1240_v17 = vpop.eup %1239  ;;  %1170 = vmatpush3.msra.mxu1 %v683_v63 }
 0x409   :  { %1171 = vmatprep.subr.mxu1 %v682_v13  ;;  %v675_v42 = vmul.f32 %v1240_v17, %v657_v31 }
 0x40a   :  { %1172 = vmatpush3.msra.mxu1 %v682_v13 }
 0x40b   :  { %v681_v33 = vmax.f32 %v675_v42, 0.0 }
 0x40d   :  { %1173 = vmatprep.subr.mxu1 %v681_v33 }
 0x40e   :  { %1174 = vmatpush3.msra.mxu1 %v681_v33 }
 0x40f   :  { %1176 = vmatmul.mubr.msk.f32.vlgmr.msra.gmra.mxu1 %vm693_vm12, %v688_v49  ;;  %1184 = vmatprep.subr.mxu1 %v1253_v1 }
 0x410   :  { %1178 = vmatprep.mubr.msk.f32.mxu1 %vm693_vm12, %v689_v46 }
 0x413   :  { %1179 = vmatmul.mubr.msk.f32.gmra.mxu1 %vm693_vm12, %v690_v16 }
 0x414   :  { %1181 = vmatprep.mubr.msk.f32.mxu1 %vm693_vm12, %v691_v47 }
 0x417   :  { %1182 = vmatmul.mubr.msk.f32.gmra.mxu1 %vm693_vm12, %v692_v50 }
 0x418   :  { %1196 = vmatprep.mubr.msk.f32.mxu1 %vm1262_vm13, %v1253_v1 }
 0x4cf   :  { %v1745_v51 = vpop.f32.mrf.mxu1 }
 0x4d0   :  { %v826_v15 = vmul.f32 %v1745_v51, %v1745_v51 }
 0x4d1   :  { %v1747_v52 = vpop.f32.mrf.mxu1 }
 0x4d2   :  { %v825_v62 = vmul.f32 %v1747_v52, %v1747_v52 }
 0x4d3   :  { %v1749_v53 = vpop.f32.mrf.mxu1 }
 0x4d4   :  { %813 = vadd.xlane.f32.xlu0 %v1749_v53  ;;  %v828_v55 = vmul.f32 %v1749_v53, %v1749_v53 }
 0x4d5   :  { %v1754_v56 = vpop.f32.mrf.mxu1 }
 0x4d6   :  { %837 = vadd.xlane.f32.xlu1 %v828_v55  ;;  %v827_v19 = vmul.f32 %v1754_v56, %v1754_v56 }
 0x4d7   :  { %v1756_v57 = vpop.f32.mrf.mxu1 }
 0x4d8   :  { %811 = vadd.xlane.f32.xlu0 %v1754_v56  ;;  %v830_v59 = vmul.f32 %v1756_v57, %v1756_v57 }
 0x4d9   :  { %v1760_v18 = vpop.f32.mrf.mxu1 }
 0x4da   :  { %817 = vadd.xlane.f32.xlu1 %v1756_v57  ;;  %v829_v48 = vmul.f32 %v1760_v18, %v1760_v18 }
 0x4dc   :  { %815 = vadd.xlane.f32.xlu0 %v1760_v18 }
 0x4de   :  { %841 = vadd.xlane.f32.xlu1 %v830_v59 }
 0x4e0   :  { %809 = vadd.xlane.f32.xlu0 %v1745_v51 }
 0x4e2   :  { %839 = vadd.xlane.f32.xlu1 %v829_v48 }
 0x4e4   :  { %807 = vadd.xlane.f32.xlu0 %v1747_v52 }
 0x4e6   :  { %835 = vadd.xlane.f32.xlu1 %v827_v19 }
 0x4e8   :  { %831 = vadd.xlane.f32.xlu0 %v825_v62 }
 0x4ea   :  { %833 = vadd.xlane.f32.xlu1 %v826_v15 }
 0x55d   :  { %v814_v2 = vpop.xlane.xlu0 %813 }
 0x55e   :  { %v1777_v5 = vmul.f32 0.0078125, %v814_v2 }
 0x55f   :  { %v838_v8 = vpop.xlane.xlu1 %837 }
 0x560   :  { %v852_v54 = vmul.f32 %v1777_v5, %v1777_v5  ;;  %v846_v9 = vmul.f32 0.0078125, %v838_v8 }
 0x561   :  { %v812_v29 = vpop.xlane.xlu0 %811 }
 0x562   :  { %v858_v23 = vsub.f32 %v846_v9, %v852_v54  ;;  %v821_v4 = vmul.f32 0.0078125, %v812_v29  ;;  %v870_v54 = vsub.f32 %v1749_v53, %v1777_v5 }
 0x563   :  { %v818_v14 = vpop.xlane.xlu1 %817 }
 0x564   :  { %v824_v7 = vmul.f32 0.0078125, %v818_v14  ;;  %v864_v30 = vmax.f32 %v858_v23, 0.0  ;;  %v851_v10 = vmul.f32 %v821_v4, %v821_v4 }
 0x565   :  { %v816_v20 = vpop.xlane.xlu0 %815 }
 0x566   :  { %v854_v38 = vmul.f32 %v824_v7, %v824_v7  ;;  %v823_v26 = vmul.f32 0.0078125, %v816_v20  ;;  %v876_v12 = vadd.f32 1e-05, %v864_v30  ;;  %v872_v15 = vsub.f32 %v1756_v57, %v824_v7 }
 0x567   :  { %v842_v25 = vpop.xlane.xlu1 %841 }
 0x568   :  { %v848_v27 = vmul.f32 0.0078125, %v842_v25  ;;  %v853_v35 = vmul.f32 %v823_v26, %v823_v26  ;;  %v871_v9 = vsub.f32 %v1760_v18, %v823_v26 }
 0x569   :  { %v810_v28 = vpop.xlane.xlu0 %809 }
 0x56a   :  { %v860_v32 = vsub.f32 %v848_v27, %v854_v38  ;;  %v820_v45 = vmul.f32 0.0078125, %v810_v28  ;;  %v869_v27 = vsub.f32 %v1754_v56, %v821_v4  ;;  %v1015_v4 = vld [vmem:[%s1837_s7] sm:$0xff] }
 0x56b   :  { %v840_v34 = vpop.xlane.xlu1 %839 }
 0x56c   :  { %v866_v36 = vmax.f32 %v860_v32, 0.0  ;;  %v847_v39 = vmul.f32 0.0078125, %v840_v34  ;;  %v850_v49 = vmul.f32 %v820_v45, %v820_v45  ;;  %v868_v53 = vsub.f32 %v1745_v51, %v820_v45  ;;  %v898_v51 = vld [vmem:[%s1836_s5 + $0x8] sm:$0xff] }
 0x56d   :  { %v808_v40 = vpop.xlane.xlu0 %807 }
 0x56e   :  { %v878_v41 = vadd.f32 1e-05, %v866_v36  ;;  %v859_v24 = vsub.f32 %v847_v39, %v853_v35  ;;  %v819_v43 = vmul.f32 0.0078125, %v808_v40  ;;  %v897_v36 = vld [vmem:[%s1836_s5] sm:$0xff]  ;;  %v1263_v39 = vmov 0  }
 0x56f   :  { %v836_v44 = vpop.xlane.xlu1 %835  ;;  %1225 = vset.pattern.permute.xlu1 %v1263_v39  ;;  %1226 = vset.pattern.permute.xlu0 %v1263_v39  ;;  %v990_v40 = vshrl.u32 %v32_v11, 7 }
 0x570   :  { %1241 = vrsqrt.f32 %v878_v41  ;;  %v865_v22 = vmax.f32 %v859_v24, 0.0  ;;  %v845_v58 = vmul.f32 0.0078125, %v836_v44  ;;  %v849_v13 = vmul.f32 %v819_v43, %v819_v43  ;;  %1018 = vperm.xlu1 %1225, %v1015_v4  }
 0x571   :  { %v832_v63 = vpop.xlane.xlu0 %831  ;;  %1243 = vrsqrt.f32 %v876_v12  ;;  %v867_v18 = vsub.f32 %v1747_v52, %v819_v43  ;;  %v899_v52 = vld [vmem:[%s1836_s5 + $0x10] sm:$0xff]  ;;  %v991_v41 = vsub.s32 0, %v990_v40 }
 0x572   :  { %v877_v31 = vadd.f32 1e-05, %v865_v22  ;;  %v843_v17 = vmul.f32 0.0078125, %v832_v63  ;;  %v857_v42 = vsub.f32 %v845_v58, %v851_v10 }
 0x573   :  { %v834_v33 = vpop.xlane.xlu1 %833  ;;  %v1003_v43 = vrot.slane %v1614_v61, %v991_v41  ;;  %v1010_v44 = vrot.slane %v1640_v3, %v991_v41  ;;  %v992_v22 = vrot.slane %v1636_v37, %v991_v41  ;;  %v998_v11 = vrot.slane %v1617_v0, %v991_v41 }
 0x574   :  { %1245 = vrsqrt.f32 %v877_v31  ;;  %v855_v46 = vsub.f32 %v843_v17, %v849_v13  ;;  %v844_v16 = vmul.f32 0.0078125, %v834_v33  ;;  %v863_v47 = vmax.f32 %v857_v42, 0.0 }
 0x575   :  { %v1004_v58 = vsub.f32 %v1434_v6, %v1003_v43  ;;  %v1011_v63 = vsub.f32 %v1442_v21, %v1010_v44  ;;  %v993_v13 = vsub.f32 %v1426_v60, %v992_v22  ;;  %v1014_v6 = vld [vmem:[%s1838_s6] sm:$0xff] }
 0x576   :  { %v861_v50 = vmax.f32 %v855_v46, 0.0  ;;  %v856_v55 = vsub.f32 %v844_v16, %v850_v49  ;;  %v875_v59 = vadd.f32 1e-05, %v863_v47 }
 0x578   :  { %v873_v48 = vadd.f32 1e-05, %v861_v50  ;;  %v862_v19 = vmax.f32 %v856_v55, 0.0  ;;  %1247 = vrsqrt.f32 %v875_v59 }
 0x57a   :  { %1249 = vrsqrt.f32 %v873_v48  ;;  %v874_v62 = vadd.f32 1e-05, %v862_v19 }
 0x57c   :  { %1251 = vrsqrt.f32 %v874_v62 }
 0x57d   :  { %v1242_v2 = vpop.eup %1241 }
 0x57e   :  { %v890_v8 = vmul.f32 %v1242_v2, %v872_v15  ;;  %v1244_v29 = vpop.eup %1243 }
 0x57f   :  { %v888_v25 = vmul.f32 %v1244_v29, %v870_v54 }
 0x580   :  { %v896_v14 = vmax.f32 %v890_v8, 0.0 }
 0x581   :  { %v1246_v20 = vpop.eup %1245  ;;  %v894_v7 = vmax.f32 %v888_v25, 0.0 }
 0x582   :  { %1185 = vmatpush3.msra.mxu1 %v896_v14  ;;  %v889_v23 = vmul.f32 %v1246_v20, %v871_v9 }
 0x583   :  { %1186 = vmatprep.subr.mxu1 %v1253_v1 }
 0x584   :  { %v895_v38 = vmax.f32 %v889_v23, 0.0 }
 0x585   :  { %v1248_v57 = vpop.eup %1247 }
 0x586   :  { %1187 = vmatpush3.msra.mxu1 %v895_v38  ;;  %v887_v30 = vmul.f32 %v1248_v57, %v869_v27 }
 0x587   :  { %v1250_v28 = vpop.eup %1249  ;;  %1188 = vmatprep.subr.mxu1 %v1253_v1 }
 0x588   :  { %1189 = vmatpush3.msra.mxu1 %v894_v7  ;;  %v893_v26 = vmax.f32 %v887_v30, 0.0  ;;  %v885_v34 = vmul.f32 %v1250_v28, %v867_v18 }
 0x589   :  { %v1252_v5 = vpop.eup %1251  ;;  %1190 = vmatprep.subr.mxu1 %v1253_v1 }
 0x58a   :  { %v886_v32 = vmul.f32 %v1252_v5, %v868_v53  ;;  %1191 = vmatpush3.msra.mxu1 %v893_v26  ;;  %v891_v35 = vmax.f32 %v885_v34, 0.0 }
 0x58b   :  { %1192 = vmatprep.subr.mxu1 %v1253_v1 }
 0x58c   :  { %v892_v56 = vmax.f32 %v886_v32, 0.0 }
 0x58e   :  { %1193 = vmatpush3.msra.mxu1 %v892_v56 }
 0x58f   :  { %1194 = vmatprep.subr.mxu1 %v1253_v1 }
 0x590   :  { %1195 = vmatpush3.msra.mxu1 %v891_v35 }
 0x591   :  { %1197 = vmatmul.mubr.msk.f32.vlgmr.msra.gmra.mxu1 %vm693_vm12, %v897_v36  ;;  %1205 = vmatprep.subr.mxu1 %v1253_v1 }
 0x592   :  { %1199 = vmatprep.mubr.msk.f32.mxu1 %vm1262_vm13, %v1253_v1 }
 0x595   :  { %1200 = vmatmul.mubr.msk.f32.gmra.mxu1 %vm693_vm12, %v898_v51 }
 0x596   :  { %1202 = vmatprep.mubr.msk.f32.mxu1 %vm1262_vm13, %v1253_v1 }
 0x599   :  { %1203 = vmatmul.mubr.msk.f32.gmra.mxu1 %vm693_vm12, %v899_v52 }
 0x59a   :  { %1211 = vmatprep.mubr.msk.f32.mxu1 %vm1262_vm13, %v1253_v1 }
 0x5eb   :  { %v1019_v60 = vpop.permute.xlu1 %1018 }
 0x651   :  { %v975_v12 = vpop.f32.mrf.mxu1 }
 0x652   :  { %v994_v49 = vmul.f32 %v993_v13, %v975_v12 }
 0x653   :  { %v1198_v24 = vpop.f32.mrf.mxu1 }
 0x654   :  { %v999_v37 = vadd.f32 %v998_v11, %v994_v49 }
 0x655   :  { %v980_v45 = vpop.f32.mrf.mxu1 }
 0x656   :  { %v1005_v17 = vmul.f32 %v1004_v58, %v980_v45 }
 0x657   :  { %v1201_v10 = vpop.f32.mrf.mxu1 }
 0x658   :  { %v1006_v46 = vadd.f32 %v1005_v17, %v998_v11 }
 0x659   :  { %v985_v31 = vpop.f32.mrf.mxu1 }
 0x65a   :  { %v1012_v42 = vmul.f32 %v1011_v63, %v985_v31 }
 0x65b   :  { %v1204_v33 = vpop.f32.mrf.mxu1 }
 0x65c   :  { %v1013_v61 = vadd.f32 %v1012_v42, %v998_v11 }
 0x65e   :  { %1206 = vmatpush3.msra.mxu1 %v1013_v61 }
 0x65f   :  { %1207 = vmatprep.subr.mxu1 %v1253_v1 }
 0x660   :  { %1208 = vmatpush3.msra.mxu1 %v1006_v46 }
 0x661   :  { %1209 = vmatprep.subr.mxu1 %v1253_v1 }
 0x662   :  { %1210 = vmatpush3.msra.mxu1 %v999_v37 }
 0x663   :  { %1212 = vmatmul.mubr.msk.f32.vlgmr.msra.gmra.mxu1 %vm1021_vm14, %v1014_v6 }
 0x723   :  { %v1091_v21 = vpop.f32.mrf.mxu1 }
 0x724   :  { %v1092_v0 = vadd.f32 %v1091_v21, %v1019_v60 }
 0x725   :  { %v1213_v3 = vpop.f32.mrf.mxu1 }
 0x726   :  { %1095 = vst [vmem:[%s1839_s8] sm:$0xff] %v1092_v0 }

</bundles_post_ra>
